<compile_context>
chip_gen: v6e
topology: v6e:2x2x1
jax: 0.10.0
libtpu: 0.0.40
codegen_flags: <defaults>
</compile_context>

<pallas_src>
import jax
import jax.numpy as jnp
from jax.experimental import pallas as pl
from jax.experimental.pallas import tpu as pltpu


def _round_up(v, m):
    return ((v + m - 1) // m) * m


def _unfold_nchw(x, k, stride, padding):
    """PyTorch-F.unfold-compatible im2col.

    x: (B, C, H, W) -> (B, L, C*K*K) with column index c*k*k + ki*k + kj and
    L enumerating output positions row-major.
    """
    b, c, H, W = x.shape
    xp = jnp.pad(x, ((0, 0), (0, 0), (padding, padding), (padding, padding)))
    n_H = (H + 2 * padding - k) // stride + 1
    n_W = (W + 2 * padding - k) // stride + 1
    cols = []
    for ki in range(k):
        for kj in range(k):
            cols.append(
                xp[:, :, ki:ki + stride * n_H:stride, kj:kj + stride * n_W:stride])
    p = jnp.stack(cols, axis=2)            # (B, C, K*K, n_H, n_W)
    p = p.transpose(0, 3, 4, 1, 2)         # (B, n_H, n_W, C, K*K)
    return p.reshape(b, n_H * n_W, c * k * k), n_H, n_W


def _dk_conv2d_kernel(patches_ref, bias_ref,
                      wa1_ref, ba1_ref, wa2_ref, ba2_ref, wa3_ref, ba3_ref,
                      rmat_ref, w_ref, out_ref):
    # patches_ref: (1, TL, P_pad) bf16 ; out_ref: (1, TL, m_pad) f32
    p_bf = patches_ref[0]
    p = p_bf.astype(jnp.float32)                                       # (TL, P_pad)

    # attention1: kxk conv (expressed as patches @ W) -> ReLU -> 1x1 -> ReLU
    #             -> 1x1 -> Sigmoid.  Kept in f32 (tiny matmuls).
    a = jnp.dot(p, wa1_ref[...], preferred_element_type=jnp.float32) + ba1_ref[...]
    a = jnp.maximum(a, 0.0)
    a = jnp.dot(a, wa2_ref[...], preferred_element_type=jnp.float32) + ba2_ref[...]
    a = jnp.maximum(a, 0.0)
    a = jnp.dot(a, wa3_ref[...], preferred_element_type=jnp.float32) + ba3_ref[...]
    a = jax.nn.sigmoid(a)                                              # (TL, k2_pad)

    # Broadcast the k*k attention map over input channels via an MXU matmul
    # with a constant 0/1 replication matrix: atw[:, c*k2 + j] = a[:, j].
    # (Replaces jnp.tile -> no XLU lane replication, no extra (L, P) buffer.)
    atw = jnp.dot(a, rmat_ref[...], preferred_element_type=jnp.float32)  # (TL, P_pad)
    atx = (p * atw).astype(jnp.bfloat16)

    # Main dynamic-kernel conv as one bf16 matmul with f32 accumulation.
    y = jnp.dot(atx, w_ref[...], preferred_element_type=jnp.float32)     # (TL, m_pad)

    # attention3 bias (precomputed outside the kernel), broadcast over TL.
    out_ref[0] = y + bias_ref[0]


def dk_conv2d(x, params, *, kernel_size, stride, padding, out_planes,
              tile_l=256):
    b, n, H, W = x.shape
    k = kernel_size
    k2 = k * k
    m = out_planes

    patches, n_H, n_W = _unfold_nchw(x, k, stride, padding)   # (B, L, P)
    L = n_H * n_W
    P = n * k2

    # Lane-/sublane-aligned padded sizes.
    P_pad = _round_up(P, 128)
    m_pad = _round_up(m, 128)
    k2_pad = _round_up(k2, 128)
    TL = tile_l if L >= tile_l else _round_up(L, 16)
    L_pad = _round_up(L, TL)

    # Patches: zero-pad (L, P) -> (L_pad, P_pad), carry as bf16 (largest DMA
    # stream; halves HBM bytes, bf16-native MXU on v6e/v7x).
    patches_p = jnp.zeros((b, L_pad, P_pad), jnp.bfloat16)
    patches_p = patches_p.at[:, :L, :P].set(patches.astype(jnp.bfloat16))

    # attention1 weights (f32, zero-padded so padded lanes stay exactly zero).
    def pad2(a, r, c):
        return jnp.zeros((r, c), jnp.float32).at[:a.shape[0], :a.shape[1]].set(a)

    wa1 = pad2(params["wa1"].reshape(k2, P).T, P_pad, k2_pad)
    ba1 = pad2(params["ba1"].reshape(1, k2), 1, k2_pad)
    wa2 = pad2(params["wa2"].reshape(k2, k2).T, k2_pad, k2_pad)
    ba2 = pad2(params["ba2"].reshape(1, k2), 1, k2_pad)
    wa3 = pad2(params["wa3"].reshape(k2, k2).T, k2_pad, k2_pad)
    ba3 = pad2(params["ba3"].reshape(1, k2), 1, k2_pad)

    # Replication matrix: rmat[j, c*k2 + j] = 1 for c < n, j < k2.
    rows = jnp.tile(jnp.arange(k2), n)
    cols = (jnp.arange(n)[:, None] * k2 + jnp.arange(k2)[None, :]).reshape(-1)
    rmat = jnp.zeros((k2_pad, P_pad), jnp.float32).at[rows, cols].set(1.0)

    # Main conv weight (bf16, contraction dim first, zero-padded).
    w = jnp.zeros((P_pad, m_pad), jnp.bfloat16)
    w = w.at[:P, :m].set(params["weight"].reshape(m, P).T.astype(jnp.bfloat16))

    # attention3 bias path (AdaptiveAvgPool2d(1) + two 1x1 convs) hoisted out
    # of the kernel: M=1 matmuls have near-zero MXU utilization and would be
    # recomputed per L-tile otherwise.
    xmean = jnp.mean(x, axis=(2, 3))                           # (B, n)
    wb1 = params["wb1"].reshape(m, n).T
    wb2 = params["wb2"].reshape(m, m).T
    hb = jax.nn.relu(jnp.matmul(xmean, wb1) + params["bb1"])
    bias = jnp.matmul(hb, wb2) + params["bb2"]                 # (B, m)
    bias_p = jnp.zeros((b, 1, m_pad), jnp.float32).at[:, 0, :m].set(bias)

    def const2d(shape):
        return pl.BlockSpec(shape, lambda bi, li: (0, 0))

    grid = (b, L_pad // TL)
    grid_spec = pltpu.PrefetchScalarGridSpec(
        num_scalar_prefetch=0,
        grid=grid,
        in_specs=[
            pl.BlockSpec((1, TL, P_pad), lambda bi, li: (bi, li, 0)),  # patches
            pl.BlockSpec((1, 1, m_pad), lambda bi, li: (bi, 0, 0)),    # fused bias
            const2d((P_pad, k2_pad)), const2d((1, k2_pad)),            # attn1 conv1
            const2d((k2_pad, k2_pad)), const2d((1, k2_pad)),           # attn1 conv2
            const2d((k2_pad, k2_pad)), const2d((1, k2_pad)),           # attn1 conv3
            const2d((k2_pad, P_pad)),                                  # replication
            const2d((P_pad, m_pad)),                                   # main weight
        ],
        out_specs=pl.BlockSpec((1, TL, m_pad), lambda bi, li: (bi, li, 0)),
    )

    # VMEM budget: double-buffered I/O tiles + (double-buffered) weights +
    # in-kernel f32 temporaries, with headroom; capped at v7x's 64 MiB.
    weight_bytes = sum(int(a.size) * a.dtype.itemsize
                       for a in (wa1, ba1, wa2, ba2, wa3, ba3, rmat, w))
    io_bytes = 2 * (TL * P_pad * 2 + TL * m_pad * 4 + m_pad * 4)
    tmp_bytes = 8 * TL * max(P_pad, m_pad, k2_pad) * 4
    vmem_limit = int(max(32 << 20,
                         min(2 * weight_bytes + io_bytes + tmp_bytes + (8 << 20),
                             64 << 20)))

    y = pl.pallas_call(
        _dk_conv2d_kernel,
        out_shape=jax.ShapeDtypeStruct((b, L_pad, m_pad), jnp.float32),
        grid_spec=grid_spec,
        compiler_params=pltpu.CompilerParams(
            dimension_semantics=("parallel", "parallel"),
            vmem_limit_bytes=vmem_limit),
    )(patches_p, bias_p, wa1, ba1, wa2, ba2, wa3, ba3, rmat, w)

    # (B, L_pad, m_pad) -> crop padding -> (B, m, n_H, n_W)  (== F.fold, k=1).
    y = y[:, :L, :m]
    return y.reshape(b, n_H, n_W, m).transpose(0, 3, 1, 2)


def dk_conv2d_ref(x, params, *, kernel_size, stride, padding, out_planes):
    """Pure-JAX f32 reference mirroring the PyTorch forward pass."""
    b, n, H, W = x.shape
    k = kernel_size
    k2 = k * k
    m = out_planes
    patches, n_H, n_W = _unfold_nchw(x, k, stride, padding)   # (B, L, P)
    hi = jax.lax.Precision.HIGHEST

    wa1 = params["wa1"].reshape(k2, n * k2).T
    wa2 = params["wa2"].reshape(k2, k2).T
    wa3 = params["wa3"].reshape(k2, k2).T
    w = params["weight"].reshape(m, n * k2).T
    wb1 = params["wb1"].reshape(m, n).T
    wb2 = params["wb2"].reshape(m, m).T

    a = jax.nn.relu(jnp.matmul(patches, wa1, precision=hi) + params["ba1"])
    a = jax.nn.relu(jnp.matmul(a, wa2, precision=hi) + params["ba2"])
    a = jax.nn.sigmoid(jnp.matmul(a, wa3, precision=hi) + params["ba3"])
    atw = jnp.tile(a, (1, 1, n))
    y = jnp.matmul(patches * atw, w, precision=hi)            # (B, L, m)

    xmean = jnp.mean(x, axis=(2, 3))                          # (B, n)
    h = jax.nn.relu(jnp.matmul(xmean, wb1, precision=hi) + params["bb1"])
    bias = jnp.matmul(h, wb2, precision=hi) + params["bb2"]   # (B, m)
    y = y + bias[:, None, :]
    return y.reshape(b, n_H, n_W, m).transpose(0, 3, 1, 2)


def init_params(key, in_planes, out_planes, kernel_size):
    k = kernel_size
    k2 = k * k
    keys = jax.random.split(key, 11)
    s = 0.1
    rn = lambda kk, shape: (jax.random.normal(kk, shape, jnp.float32) * s)
    return {
        # attention1: Conv2d(n, k^2, k), Conv2d(k^2, k^2, 1), Conv2d(k^2, k^2, 1)
        "wa1": rn(keys[0], (k2, in_planes, k, k)),
        "ba1": rn(keys[1], (k2,)),
        "wa2": rn(keys[2], (k2, k2, 1, 1)),
        "ba2": rn(keys[3], (k2,)),
        "wa3": rn(keys[4], (k2, k2, 1, 1)),
        "ba3": rn(keys[5], (k2,)),
        # main conv weight: Conv2d(n, m, k)
        "weight": rn(keys[6], (out_planes, in_planes, k, k)),
        # attention3: Conv2d(n, m, 1), Conv2d(m, m, 1)
        "wb1": rn(keys[7], (out_planes, in_planes, 1, 1)),
        "bb1": rn(keys[8], (out_planes,)),
        "wb2": rn(keys[9], (out_planes, out_planes, 1, 1)),
        "bb2": rn(keys[10], (out_planes,)),
    }


if __name__ == "__main__":
    B, C_IN, C_OUT, HW = 2, 4, 8, 16
    K, STRIDE, PAD = 3, 1, 1

    key = jax.random.PRNGKey(0)
    kx, kp = jax.random.split(key)
    x = jax.random.normal(kx, (B, C_IN, HW, HW), jnp.float32)   # NCHW
    params = init_params(kp, C_IN, C_OUT, K)

    out = dk_conv2d(x, params, kernel_size=K, stride=STRIDE,
                    padding=PAD, out_planes=C_OUT)
    out = jax.block_until_ready(out)

    ref = dk_conv2d_ref(x, params, kernel_size=K, stride=STRIDE,
                        padding=PAD, out_planes=C_OUT)
    ref = jax.block_until_ready(ref)

    assert out.shape == (B, C_OUT, HW, HW), out.shape
    # The hot matmul carries patches / main weight in bf16, so compare against
    # the f32 HIGHEST reference at bf16-level tolerance.
    assert jnp.allclose(out, ref, rtol=2e-2, atol=2e-2), \
        float(jnp.max(jnp.abs(out - ref)))

    print("KERNEL_OK")
</pallas_src>

<mosaic_0001>
module attributes {stable_mosaic.version = 11 : i64} {
  func.func @_dk_conv2d_kernel(%arg0: i32, %arg1: i32, %arg2: memref<1x256x128xbf16, #tpu.memory_space<vmem>>, %arg3: memref<1x1x128xf32, #tpu.memory_space<vmem>>, %arg4: memref<128x128xf32, #tpu.memory_space<vmem>>, %arg5: memref<1x128xf32, #tpu.memory_space<vmem>>, %arg6: memref<128x128xf32, #tpu.memory_space<vmem>>, %arg7: memref<1x128xf32, #tpu.memory_space<vmem>>, %arg8: memref<128x128xf32, #tpu.memory_space<vmem>>, %arg9: memref<1x128xf32, #tpu.memory_space<vmem>>, %arg10: memref<128x128xf32, #tpu.memory_space<vmem>>, %arg11: memref<128x128xbf16, #tpu.memory_space<vmem>>, %arg12: memref<1x256x128xf32, #tpu.memory_space<vmem>>) attributes {dimension_semantics = [#tpu.dimension_semantics<parallel>, #tpu.dimension_semantics<parallel>], iteration_bounds = array<i64: 2, 1>, scalar_prefetch = 0 : i64, scratch_operands = 0 : i64, tpu.core_type = #tpu.core_type<tc>, window_params = [{transform_indices = @transform_0, window_bounds = array<i64: 1, 256, 128>}, {transform_indices = @transform_1, window_bounds = array<i64: 1, 1, 128>}, {pipeline_mode = #tpu.pipeline_mode<synchronous>, transform_indices = @transform_2, window_bounds = array<i64: 128, 128>}, {pipeline_mode = #tpu.pipeline_mode<synchronous>, transform_indices = @transform_3, window_bounds = array<i64: 1, 128>}, {pipeline_mode = #tpu.pipeline_mode<synchronous>, transform_indices = @transform_4, window_bounds = array<i64: 128, 128>}, {pipeline_mode = #tpu.pipeline_mode<synchronous>, transform_indices = @transform_5, window_bounds = array<i64: 1, 128>}, {pipeline_mode = #tpu.pipeline_mode<synchronous>, transform_indices = @transform_6, window_bounds = array<i64: 128, 128>}, {pipeline_mode = #tpu.pipeline_mode<synchronous>, transform_indices = @transform_7, window_bounds = array<i64: 1, 128>}, {pipeline_mode = #tpu.pipeline_mode<synchronous>, transform_indices = @transform_8, window_bounds = array<i64: 128, 128>}, {pipeline_mode = #tpu.pipeline_mode<synchronous>, transform_indices = @transform_9, window_bounds = array<i64: 128, 128>}, {transform_indices = @transform_10, window_bounds = array<i64: 1, 256, 128>}]} {
    %c0 = arith.constant 0 : index
    %c0_0 = arith.constant 0 : index
    %c0_1 = arith.constant 0 : index
    %0 = vector.load %arg2[%c0, %c0_0, %c0_1] : memref<1x256x128xbf16, #tpu.memory_space<vmem>>, vector<1x256x128xbf16>
    %1 = vector.shape_cast %0 : vector<1x256x128xbf16> to vector<256x128xbf16>
    %2 = arith.extf %1 : vector<256x128xbf16> to vector<256x128xf32>
    %c0_2 = arith.constant 0 : index
    %c0_3 = arith.constant 0 : index
    %3 = vector.load %arg4[%c0_2, %c0_3] : memref<128x128xf32, #tpu.memory_space<vmem>>, vector<128x128xf32>
    %cst = arith.constant dense<0.000000e+00> : vector<256x128xf32>
    %4 = tpu.matmul %2, %3, %cst {dimension_numbers = #tpu.dot_dimension_numbers<[1], [0], [0], [1], [0, 0, 1, 1], [], []>} : vector<256x128xf32>, vector<128x128xf32>, vector<256x128xf32> -> vector<256x128xf32>
    %c0_4 = arith.constant 0 : index
    %c0_5 = arith.constant 0 : index
    %5 = vector.load %arg5[%c0_4, %c0_5] : memref<1x128xf32, #tpu.memory_space<vmem>>, vector<1x128xf32>
    %6 = vector.broadcast %5 : vector<1x128xf32> to vector<256x128xf32>
    %7 = arith.addf %4, %6 : vector<256x128xf32>
    %cst_6 = arith.constant 0.000000e+00 : f32
    %8 = vector.broadcast %cst_6 : f32 to vector<256x128xf32>
    %9 = arith.maximumf %7, %8 : vector<256x128xf32>
    %c0_7 = arith.constant 0 : index
    %c0_8 = arith.constant 0 : index
    %10 = vector.load %arg6[%c0_7, %c0_8] : memref<128x128xf32, #tpu.memory_space<vmem>>, vector<128x128xf32>
    %cst_9 = arith.constant dense<0.000000e+00> : vector<256x128xf32>
    %11 = tpu.matmul %9, %10, %cst_9 {dimension_numbers = #tpu.dot_dimension_numbers<[1], [0], [0], [1], [0, 0, 1, 1], [], []>} : vector<256x128xf32>, vector<128x128xf32>, vector<256x128xf32> -> vector<256x128xf32>
    %c0_10 = arith.constant 0 : index
    %c0_11 = arith.constant 0 : index
    %12 = vector.load %arg7[%c0_10, %c0_11] : memref<1x128xf32, #tpu.memory_space<vmem>>, vector<1x128xf32>
    %13 = vector.broadcast %12 : vector<1x128xf32> to vector<256x128xf32>
    %14 = arith.addf %11, %13 : vector<256x128xf32>
    %cst_12 = arith.constant 0.000000e+00 : f32
    %15 = vector.broadcast %cst_12 : f32 to vector<256x128xf32>
    %16 = arith.maximumf %14, %15 : vector<256x128xf32>
    %c0_13 = arith.constant 0 : index
    %c0_14 = arith.constant 0 : index
    %17 = vector.load %arg8[%c0_13, %c0_14] : memref<128x128xf32, #tpu.memory_space<vmem>>, vector<128x128xf32>
    %cst_15 = arith.constant dense<0.000000e+00> : vector<256x128xf32>
    %18 = tpu.matmul %16, %17, %cst_15 {dimension_numbers = #tpu.dot_dimension_numbers<[1], [0], [0], [1], [0, 0, 1, 1], [], []>} : vector<256x128xf32>, vector<128x128xf32>, vector<256x128xf32> -> vector<256x128xf32>
    %c0_16 = arith.constant 0 : index
    %c0_17 = arith.constant 0 : index
    %19 = vector.load %arg9[%c0_16, %c0_17] : memref<1x128xf32, #tpu.memory_space<vmem>>, vector<1x128xf32>
    %20 = vector.broadcast %19 : vector<1x128xf32> to vector<256x128xf32>
    %21 = arith.addf %18, %20 : vector<256x128xf32>
    %22 = arith.negf %21 : vector<256x128xf32>
    %23 = math.exp %22 : vector<256x128xf32>
    %cst_18 = arith.constant 1.000000e+00 : f32
    %24 = vector.broadcast %cst_18 : f32 to vector<256x128xf32>
    %25 = arith.addf %24, %23 : vector<256x128xf32>
    %26 = arith.divf %24, %25 : vector<256x128xf32>
    %c0_19 = arith.constant 0 : index
    %c0_20 = arith.constant 0 : index
    %27 = vector.load %arg10[%c0_19, %c0_20] : memref<128x128xf32, #tpu.memory_space<vmem>>, vector<128x128xf32>
    %cst_21 = arith.constant dense<0.000000e+00> : vector<256x128xf32>
    %28 = tpu.matmul %26, %27, %cst_21 {dimension_numbers = #tpu.dot_dimension_numbers<[1], [0], [0], [1], [0, 0, 1, 1], [], []>} : vector<256x128xf32>, vector<128x128xf32>, vector<256x128xf32> -> vector<256x128xf32>
    %29 = arith.mulf %2, %28 : vector<256x128xf32>
    %30 = arith.truncf %29 : vector<256x128xf32> to vector<256x128xbf16>
    %c0_22 = arith.constant 0 : index
    %c0_23 = arith.constant 0 : index
    %31 = vector.load %arg11[%c0_22, %c0_23] : memref<128x128xbf16, #tpu.memory_space<vmem>>, vector<128x128xbf16>
    %cst_24 = arith.constant dense<0.000000e+00> : vector<256x128xf32>
    %32 = tpu.matmul %30, %31, %cst_24 {dimension_numbers = #tpu.dot_dimension_numbers<[1], [0], [0], [1], [0, 0, 1, 1], [], []>} : vector<256x128xbf16>, vector<128x128xbf16>, vector<256x128xf32> -> vector<256x128xf32>
    %c0_25 = arith.constant 0 : index
    %c0_26 = arith.constant 0 : index
    %c0_27 = arith.constant 0 : index
    %33 = vector.load %arg3[%c0_25, %c0_26, %c0_27] : memref<1x1x128xf32, #tpu.memory_space<vmem>>, vector<1x1x128xf32>
    %34 = vector.shape_cast %33 : vector<1x1x128xf32> to vector<1x128xf32>
    %35 = vector.broadcast %34 : vector<1x128xf32> to vector<256x128xf32>
    %36 = arith.addf %32, %35 : vector<256x128xf32>
    %c0_28 = arith.constant 0 : index
    %c0_29 = arith.constant 0 : index
    %c0_30 = arith.constant 0 : index
    %37 = vector.load %arg12[%c0_28, %c0_29, %c0_30] : memref<1x256x128xf32, #tpu.memory_space<vmem>>, vector<1x256x128xf32>
    %38 = vector.shape_cast %37 : vector<1x256x128xf32> to vector<256x128xf32>
    %39 = vector.shape_cast %36 : vector<256x128xf32> to vector<1x256x128xf32>
    tpu.vector_store %arg12[%c0_28, %c0_29, %c0_30], %39 {strides = array<i32>} : memref<1x256x128xf32, #tpu.memory_space<vmem>>, vector<1x256x128xf32>,
    return
  }
  func.func @transform_0(%arg0: i32, %arg1: i32) -> (i32, i32, i32) {
    %c0_i32 = arith.constant 0 : i32
    %c0_i32_0 = arith.constant 0 : i32
    return %arg0, %arg1, %c0_i32 : i32, i32, i32
  }
  func.func @transform_1(%arg0: i32, %arg1: i32) -> (i32, i32, i32) {
    %c0_i32 = arith.constant 0 : i32
    %c0_i32_0 = arith.constant 0 : i32
    %c0_i32_1 = arith.constant 0 : i32
    return %arg0, %c0_i32, %c0_i32_0 : i32, i32, i32
  }
  func.func @transform_2(%arg0: i32, %arg1: i32) -> (i32, i32) {
    %c0_i32 = arith.constant 0 : i32
    %c0_i32_0 = arith.constant 0 : i32
    %c0_i32_1 = arith.constant 0 : i32
    return %c0_i32, %c0_i32_0 : i32, i32
  }
  func.func @transform_3(%arg0: i32, %arg1: i32) -> (i32, i32) {
    %c0_i32 = arith.constant 0 : i32
    %c0_i32_0 = arith.constant 0 : i32
    %c0_i32_1 = arith.constant 0 : i32
    return %c0_i32, %c0_i32_0 : i32, i32
  }
  func.func @transform_4(%arg0: i32, %arg1: i32) -> (i32, i32) {
    %c0_i32 = arith.constant 0 : i32
    %c0_i32_0 = arith.constant 0 : i32
    %c0_i32_1 = arith.constant 0 : i32
    return %c0_i32, %c0_i32_0 : i32, i32
  }
  func.func @transform_5(%arg0: i32, %arg1: i32) -> (i32, i32) {
    %c0_i32 = arith.constant 0 : i32
    %c0_i32_0 = arith.constant 0 : i32
    %c0_i32_1 = arith.constant 0 : i32
    return %c0_i32, %c0_i32_0 : i32, i32
  }
  func.func @transform_6(%arg0: i32, %arg1: i32) -> (i32, i32) {
    %c0_i32 = arith.constant 0 : i32
    %c0_i32_0 = arith.constant 0 : i32
    %c0_i32_1 = arith.constant 0 : i32
    return %c0_i32, %c0_i32_0 : i32, i32
  }
  func.func @transform_7(%arg0: i32, %arg1: i32) -> (i32, i32) {
    %c0_i32 = arith.constant 0 : i32
    %c0_i32_0 = arith.constant 0 : i32
    %c0_i32_1 = arith.constant 0 : i32
    return %c0_i32, %c0_i32_0 : i32, i32
  }
  func.func @transform_8(%arg0: i32, %arg1: i32) -> (i32, i32) {
    %c0_i32 = arith.constant 0 : i32
    %c0_i32_0 = arith.constant 0 : i32
    %c0_i32_1 = arith.constant 0 : i32
    return %c0_i32, %c0_i32_0 : i32, i32
  }
  func.func @transform_9(%arg0: i32, %arg1: i32) -> (i32, i32) {
    %c0_i32 = arith.constant 0 : i32
    %c0_i32_0 = arith.constant 0 : i32
    %c0_i32_1 = arith.constant 0 : i32
    return %c0_i32, %c0_i32_0 : i32, i32
  }
  func.func @transform_10(%arg0: i32, %arg1: i32) -> (i32, i32, i32) {
    %c0_i32 = arith.constant 0 : i32
    %c0_i32_0 = arith.constant 0 : i32
    return %arg0, %arg1, %c0_i32 : i32, i32, i32
  }
}

</mosaic_0001>

<bundles_post_ra>
// kernel: tpu_custom_call.1
= control target key start
LH: loop header
LB: loop body
LE: loop exit
PB: predicated region body
PF: predicated region fallthrough
CT: control target
= control target key end

     0   :  { %s4333_s0 = inlined_call_operand.hbm [shape: bf16[2,256,128], index: 0, kind: input, shape index: {}]   ;;  %s4334_s1 = inlined_call_operand.hbm [shape: f32[2,1,128], index: 1, kind: input, shape index: {}]   ;;  %s4335_s2 = inlined_call_operand.hbm [shape: f32[128,128], index: 2, kind: input, shape index: {}]   ;;  %s4336_s3 = inlined_call_operand.vmem [shape: f32[1,128], index: 3, kind: input, shape index: {}]   ;;  %s4337_s4 = inlined_call_operand.hbm [shape: f32[128,128], index: 4, kind: input, shape index: {}]   ;;  %s4338_s5 = inlined_call_operand.vmem [shape: f32[1,128], index: 5, kind: input, shape index: {}]   ;;  %s4339_s6 = inlined_call_operand.hbm [shape: f32[128,128], index: 6, kind: input, shape index: {}]   ;;  %s4340_s7 = inlined_call_operand.vmem [shape: f32[1,128], index: 7, kind: input, shape index: {}]   ;;  %s4341_s8 = inlined_call_operand.hbm [shape: f32[128,128], index: 8, kind: input, shape index: {}]   ;;  %s4342_s9 = inlined_call_operand.hbm [shape: bf16[128,128], index: 9, kind: input, shape index: {}]   ;;  %s4343_s10 = inlined_call_operand.hbm [shape: f32[2,256,128], index: 10, kind: output, shape index: {}]  }
   0x1   :  { %4362 = sst [smem:[#allocation27_spill]] %s4333_s0 }
   0x2   :  { %4363 = sst [smem:[#allocation28_spill]] %s4335_s2 }
   0x3   :  { %4364 = sst [smem:[#allocation29_spill]] %s4337_s4 }
   0x4   :  { %4365 = sst [smem:[#allocation30_spill]] %s4339_s6 }
   0x5   :  { %4366 = sst [smem:[#allocation31_spill]] %s4341_s8 }
   0x6   :  { %4367 = sst [smem:[#allocation32_spill]] %s4342_s9 }
   0x7   :  { %15 = vsyncpa [#allocation3], 0 }
   0x8   :  { %17 = vsyncpa [#allocation3 + $0x1], 0 }
   0x9   :  { %18 = vsyncpa [#allocation6], 0 }
   0xa   :  { %20 = vsyncpa [#allocation6 + $0x1], 0 }
   0xb   :  { %21 = vsyncpa [#allocation9], 0 }
   0xc   :  { %22 = vsyncpa [#allocation12], 0 }
   0xd   :  { %23 = vsyncpa [#allocation4], 0 }
   0xe   :  { %25 = vsyncpa [#allocation4 + $0x1], 0  ;;  %s3672_s13 = smov 0   ;;  %s3674_s14 = smov 0  }
   0xf   :  { %s3676_s15 = smov 0   ;;  %s3678_s16 = smov 0  }
  0x10   :  { %s3680_s17 = smov 0   ;;  %s3682_s18 = smov 0  }
  0x11 LB: > { %4368 = sst [smem:[#allocation21_spill]] %s3581_s13  ;;  %s3703_s19 = sadd.s32 4294967295, %s3601_s18   ;;  %s3601_s18 = sphi %s3682_s18, %s31_s18   ;;  %s3597_s17 = sphi %s3680_s17, %s4410_s17   ;;  %s3593_s16 = sphi %s3678_s16, %s4409_s16   ;;  %s3589_s15 = sphi %s3676_s15, %s4405_s15   ;;  %s3585_s14 = sphi %s3674_s14, %s4408_s14   ;;  %s3581_s13 = sphi %s3672_s13, %s4407_s13  }
  0x12   : > { %4369 = sst [smem:[#allocation22_spill]] %s3589_s15  ;;  %p2294_p0 = scmp.ge.s32.totalorder %s3601_s18, 1 }
  0x13   : > { %4370 = sst [smem:[#allocation23_spill]] %s3601_s18  ;;  %p66_p1 = scmp.eq.s32.totalorder %s3703_s19, 0 }
  0x14   : > { %p298_p2 = scmp.lt.s32.totalorder %s3601_s18, 3  ;;  %s3603_s21 = smov [#allocation7]  }
  0x15   : > { %s310_s22 = sshll.u32 %s3603_s21, 4  ;;  %s3604_s24 = smov [#allocation8]   ;;  %s311_s22 = int_to_ptr.vmem [resolvable:$true] %s310_s22 }
  0x16   : > { %p3708_p3 = pnand %p2294_p0, %p298_p2  ;;  %s326_s25 = sshll.u32 %s3604_s24, 4  ;;  %s327_s25 = int_to_ptr.vmem [resolvable:$true] %s326_s25 }
  0x17   : > { %s3605_s26 = smov [#allocation11]   ;;  %s3330_s29 = scalar_lea.vmem %s311_s22, 2048 }
  0x18   : > { %p3085_p4 = pneg %p3708_p3  ;;  %s358_s27 = sshll.u32 %s3605_s26, 4  ;;  %s359_s27 = int_to_ptr.vmem [resolvable:$true] %s358_s27 }
  0x19   : > { %p3331_p8 = scmp.ne.s32.totalorder %s311_s22, %s3330_s29  ;;  %p3338_p11 = scmp.lt.s32.totalorder %s311_s22, %s311_s22 }
  0x1a   : > { %p3717_p6 = pnand %p3085_p4, %p66_p1  ;;  %p3339_p12 = scmp.lt.s32.totalorder %s3330_s29, %s3330_s29 }
  0x1c   : > { %p3723_p7 = pneg %p3717_p6  ;;  %p3340_p13 = por %p3339_p12, %p3338_p11 }
  0x1e   : > { %p3333_p9 = pnand %p3331_p8, %p3723_p7 }
  0x20   : > { %p3334_p10 = pneg %p3333_p9 }
  0x22   : > { %p3341_p0 = pnand %p3340_p13, %p3334_p10 }
  0x24   : > { %3344 = shalt.err (!%p3341_p0)
}
  0x25   : > { %s3606_s30 = smov 128   ;;  %s3607_s11 = smov 8  }
  0x26   : > { %s4374_s2 = sld [smem:[#allocation28_spill]]  ;;  %s3356_s24 = scalar_lea.vmem %s327_s25, 2048 }
  0x27   : > { %p3357_p2 = scmp.ne.s32.totalorder %s327_s25, %s3356_s24  ;;  %p3364_p9 = scmp.lt.s32.totalorder %s327_s25, %s327_s25 }
  0x28   : > { %p3365_p10 = scmp.lt.s32.totalorder %s3356_s24, %s3356_s24 }
  0x29   : > { %p3359_p4 = pnand %p3357_p2, %p3723_p7 }
  0x2a   : > { %p3366_p11 = por %p3365_p10, %p3364_p9 }
  0x2b   : > { %p3360_p8 = pneg %p3359_p4 }
  0x2c   : > { %3088 = dma.hbm_to_vmem [thread:$0]  (!%p3717_p6), %s4374_s2, 2048, %s311_s22, [#allocation6], %s3606_s30, %s3606_s30, %s3607_s11  }
  0x2d   : > { %p3367_p12 = pnand %p3366_p11, %p3360_p8 }
  0x2f   : > { %3370 = shalt.err (!%p3367_p12)
}
  0x30   : > { %s4375_s4 = sld [smem:[#allocation29_spill]]  ;;  %s3382_s22 = scalar_lea.vmem %s359_s27, 2048 }
  0x31   : > { %p3383_p13 = scmp.ne.s32.totalorder %s359_s27, %s3382_s22  ;;  %p3390_p4 = scmp.lt.s32.totalorder %s359_s27, %s359_s27 }
  0x32   : > { %p3391_p9 = scmp.lt.s32.totalorder %s3382_s22, %s3382_s22 }
  0x33   : > { %p3385_p0 = pnand %p3383_p13, %p3723_p7 }
  0x34   : > { %p3392_p8 = por %p3391_p9, %p3390_p4 }
  0x35   : > { %p3386_p2 = pneg %p3385_p0 }
  0x36   : > { %3091 = dma.hbm_to_vmem [thread:$0]  (!%p3717_p6), %s4375_s4, 2048, %s327_s25, [#allocation9], %s3606_s30, %s3606_s30, %s3607_s11  }
  0x37   : > { %p3393_p10 = pnand %p3392_p8, %p3386_p2 }
  0x39   : > { %3396 = shalt.err (!%p3393_p10)
}
  0x3a   : > { %s4376_s8 = sld [smem:[#allocation31_spill]]  ;;  %s3608_s25 = smov [#allocation10]  }
  0x3b   : > { %s342_s24 = sshll.u32 %s3608_s25, 4  ;;  %s3609_s26 = smov [#allocation13]   ;;  %s343_s24 = int_to_ptr.vmem [resolvable:$true] %s342_s24 }
  0x3c   : > { %s371_s29 = sshll.u32 %s3609_s26, 4  ;;  %s3408_s2 = scalar_lea.vmem %s343_s24, 2048  ;;  %s372_s29 = int_to_ptr.vmem [resolvable:$true] %s371_s29 }
  0x3d   : > { %p3409_p11 = scmp.ne.s32.totalorder %s343_s24, %s3408_s2  ;;  %p3416_p0 = scmp.lt.s32.totalorder %s343_s24, %s343_s24 }
  0x3e   : > { %p3417_p2 = scmp.lt.s32.totalorder %s3408_s2, %s3408_s2 }
  0x3f   : > { %p3411_p12 = pnand %p3409_p11, %p3723_p7 }
  0x40   : > { %3097 = dma.hbm_to_vmem [thread:$0]  (!%p3717_p6), %s4376_s8, 2048, %s359_s27, [#allocation12], %s3606_s30, %s3606_s30, %s3607_s11  }
  0x41   : > { %p3412_p13 = pneg %p3411_p12  ;;  %p3418_p4 = por %p3417_p2, %p3416_p0 }
  0x43   : > { %p3419_p9 = pnand %p3418_p4, %p3412_p13 }
  0x45   : > { %3422 = shalt.err (!%p3419_p9)
}
  0x46   : > { %s4377_s6 = sld [smem:[#allocation30_spill]]  ;;  %s3434_s12 = scalar_lea.vmem %s372_s29, 1024 }
  0x47   : > { %p3435_p8 = scmp.ne.s32.totalorder %s372_s29, %s3434_s12  ;;  %p3442_p12 = scmp.lt.s32.totalorder %s372_s29, %s372_s29 }
  0x48   : > { %p3443_p0 = scmp.lt.s32.totalorder %s3434_s12, %s3434_s12 }
  0x49   : > { %p3437_p10 = pnand %p3435_p8, %p3723_p7 }
  0x4a   : > { %p3444_p13 = por %p3443_p0, %p3442_p12 }
  0x4b   : > { %p3438_p11 = pneg %p3437_p10 }
  0x4c   : > { %3094 = dma.hbm_to_vmem [thread:$0]  (!%p3717_p6), %s4377_s6, 2048, %s343_s24, [#allocation9], %s3606_s30, %s3606_s30, %s3607_s11  }
  0x4d   : > { %p3445_p2 = pnand %p3444_p13, %p3438_p11 }
  0x4f   : > { %3448 = shalt.err (!%p3445_p2)
}
  0x50   : > { %s4344_s2 = smov 64   ;;  %s4345_s28 = smov 4  }
  0x51   : > { %s4378_s9 = sld [smem:[#allocation32_spill]]  ;;  %s2293_s21 = sadd.s32 4294967294, %s3601_s18  }
  0x52   : > { %s43_s25 = sadd.s32 1, %s3597_s17  ;;  %s52_s24 = sadd.s32 1, %s3589_s15 }
  0x53   : > { %p45_p7 = scmp.ge.s32.totalorder %s43_s25, 2  ;;  %p59_p4 = scmp.ne.s32.totalorder %s3589_s15, %s3585_s14 }
  0x54   : > { %p60_p9 = scmp.eq.s32.totalorder %s3601_s18, 0  ;;  %p65_p8 = scmp.ne.s32.totalorder %s3585_s14, %s3581_s13 }
  0x55   : > { %s4412_s25 = smov (%p45_p7, %s43_s25), 0  ;;  %p285_p11 = scmp.eq.s32.totalorder %s3703_s19, 1 }
  0x56   : > { %4379 = sst [smem:[#allocation24_spill]] %s4412_s25  ;;  %p3787_p10 = por %p60_p9, %p59_p4 }
  0x57   : > { %3100 = dma.hbm_to_vmem [thread:$0]  (!%p3717_p6), %s4378_s9, 1024, %s372_s29, [#allocation12], %s4344_s2, %s4344_s2, %s4345_s28  }
  0x58   : > { %p3793_p6 = por %p66_p1, %p65_p8  ;;  %s47_s29 = ssub.s32 %s3597_s17, %s4412_s25 }
  0x59   : > { %p50_p12 = scmp.eq.s32.totalorder %s47_s29, 0  ;;  %p291_p0 = scmp.eq.s32.totalorder %s2293_s21, 1 }
  0x5a   : > { %p3800_p13 = por %p285_p11, %p59_p4  ;;  %p3117_p2 = scmp.lt.s32.totalorder %s3601_s18, 2 }
  0x5b   : > { %s3806_s22 = scalar_select %p50_p12, %s3589_s15, %s52_s24  }
  0x5c   : > { %p3808_p7 = por %p291_p0, %p65_p8  ;;  %s3813_s30 = sand.u32 1, %s3589_s15  }
  0x5d   : > { %4383 = sst [smem:[#allocation25_spill]] %s3806_s22  ;;  %s2301_s11 = sshll.u32 %s3813_s30, 7 }
  0x5e   : > { %s4384_s12 = scalar_select %p3808_p7, 1, 0 }
  0x5f   : > { %s2362_s2 = sshll.u32 %s3597_s17, 11  ;;  %s4386_s0 = sld [smem:[#allocation27_spill]] }
  0x60   : > { %4385 = sst [smem:[#allocation26_spill]] %s4384_s12  ;;  %s389_s4 = scalar_lea.vmem [#allocation2], %s2301_s11 }
  0x61   : > { %s398_s6 = sshll.u32 %s389_s4, 4  ;;  %p3822_p4 = pnand %p3117_p2, %p3787_p10  ;;  %s399_s6 = int_to_ptr.vmem [resolvable:$true] %s398_s6 }
  0x62   : > { %s408_s8 = sand.u32 1, %s3601_s18   ;;  %s386_s9 = scalar_lea.sflag [#allocation3], %s3813_s30 }
  0x63   : > { %p3451_p9 = pneg %p3822_p4  ;;  %s3462_s25 = scalar_lea.vmem %s399_s6, 2048 }
  0x64   : > { %p3463_p8 = scmp.ne.s32.totalorder %s399_s6, %s3462_s25 }
  0x65   : > { %s397_s21 = scalar_lea.hbm %s4386_s0, %s2362_s2  ;;  %s3612_s2 = smov [#allocation2]  }
  0x66   : > { %p3465_p11 = pnand %p3463_p8, %p3451_p9  ;;  %s3467_s4 = sshll.u32 %s3612_s2, 4  ;;  %s3468_s4 = int_to_ptr.vmem [resolvable:$false] %s3467_s4 }
  0x67   : > { %s3469_s28 = scalar_lea.vmem %s3468_s4, 4096  ;;  %p3470_p10 = scmp.lt.s32.totalorder %s399_s6, %s3468_s4 }
  0x68   : > { %p3466_p12 = pneg %p3465_p11  ;;  %p3471_p0 = scmp.lt.s32.totalorder %s3469_s28, %s3462_s25 }
  0x6a   : > { %p3472_p2 = por %p3471_p0, %p3470_p10 }
  0x6c   : > { %p3473_p5 = pnand %p3472_p2, %p3466_p12 }
  0x6e   : > { %3476 = shalt.err (!%p3473_p5)
}
  0x6f   : > { %s4388_s23 = smov 4   ;;  %s4389_s11 = smov 64  }
  0x70   : > { %3104 = dma.hbm_to_vmem [thread:$0]  (!%p3822_p4), %s397_s21, 2048, %s399_s6, %s386_s9, %s4389_s11, %s4389_s11, %s4388_s23  }
  0x71   : > { %s2304_s29 = sshll.u32 %s3597_s17, 4  ;;  %s411_s0 = scalar_lea.vmem [#allocation5], %s3813_s30 }
  0x72   : > { %s418_s22 = sshll.u32 %s411_s0, 4  ;;  %s416_s4 = scalar_lea.hbm %s4334_s1, %s2304_s29  ;;  %s419_s22 = int_to_ptr.vmem [resolvable:$true] %s418_s22 }
  0x73   : > { %s409_s25 = scalar_lea.sflag [#allocation6], %s408_s8  ;;  %s3490_s28 = scalar_lea.vmem %s419_s22, 16 }
  0x74   : > { %p3491_p5 = scmp.ne.s32.totalorder %s419_s22, %s3490_s28  ;;  %s3613_s18 = smov [#allocation5]  }
  0x75   : > { %s3495_s12 = sshll.u32 %s3613_s18, 4  ;;  %s3496_s12 = int_to_ptr.vmem [resolvable:$false] %s3495_s12 }
  0x76   : > { %p3493_p8 = pnand %p3491_p5, %p3451_p9  ;;  %s3497_s13 = scalar_lea.vmem %s3496_s12, 32 }
  0x77   : > { %p3498_p12 = scmp.lt.s32.totalorder %s419_s22, %s3496_s12  ;;  %p3499_p10 = scmp.lt.s32.totalorder %s3497_s13, %s3490_s28 }
  0x78   : > { %p3494_p11 = pneg %p3493_p8 }
  0x79   : > { %p3500_p0 = por %p3499_p10, %p3498_p12 }
  0x7b   : > { %p3501_p2 = pnand %p3500_p0, %p3494_p11 }
  0x7d   : > { %3504 = shalt.err (!%p3501_p2)
}
  0x7e   : > { %3107 = dma.hbm_to_vmem [thread:$0]  (!%p3822_p4), %s416_s4, 16, %s419_s22, %s409_s25  }
  0x7f   : > { %427 = sbr.rel (%p3708_p3) target bundleno = 1280 (0x500), region = 60  ;;  %s3851_s0 = sand.u32 (!%p3708_p3), 1, %s3585_s14  }
  0x80   : > { %s2306_s6 = sshll.u32 (!%p3708_p3), %s3851_s0, 7  ;;  %s430_s8 = scalar_lea.sflag (!%p3708_p3), [#allocation3], %s3851_s0 }
  0x81   : > { %s3855_s9 = scalar_lea.vmem (!%p3708_p3), [#allocation2], %s2306_s6 }
  0x84   : > { %3556 = dma.done.wait (%p3793_p6), %s430_s8, 2048  }
  0x85   : > { %3558 = vsyncadd (%p3793_p6), %s430_s8, 4294965248  ;;  %s438_s13 = sand.u32 1, %s3703_s19   ;;  %s441_s18 = scalar_lea.vmem [#allocation5], %s3851_s0 }
  0x86   : > { %s439_s15 = scalar_lea.sflag [#allocation6], %s438_s13 }
  0x87   : > { %3560 = dma.done.wait (%p3793_p6), %s439_s15, 16  }
  0x88   : > { %3562 = vsyncadd (%p3793_p6), %s439_s15, 4294967280 }
  0x89   : > { %3564 = dma.done.wait (%p66_p1), [#allocation6], 2048  }
  0x8a   : > { %3566 = vsyncadd (%p66_p1), [#allocation6], 4294965248 }
  0x8b   : > { %3568 = dma.done.wait (%p66_p1), [#allocation9], 4096  }
  0x8c   : > { %3570 = vsyncadd (%p66_p1), [#allocation9], 4294963200 }
  0x8d   : > { %3572 = dma.done.wait (%p66_p1), [#allocation12], 3072  }
  0x8e   : > { %3574 = vsyncadd (%p66_p1), [#allocation12], 4294964224  ;;  %v584_v0 = vld [vmem:[#allocation7 + $0x78] sm:$0xff]  ;;  %v583_v1 = vld [vmem:[#allocation7 + $0x70] sm:$0xff]  ;;  %s2312_s21 = sshll.u32 %s3851_s0, 8  ;;  %s2363_s23 = sshll.u32 %s3593_s16, 12 }
  0x8f   : > { %2659 = vmatprep.subr.mxu0 %v584_v0  ;;  %3027 = vmatprep.subr.mxu1 %v584_v0  ;;  %v582_v2 = vld [vmem:[#allocation7 + $0x68] sm:$0xff]  ;;  %v581_v3 = vld [vmem:[#allocation7 + $0x60] sm:$0xff]  ;;  %v580_v5 = vld [vmem:[#allocation7 + $0x58] sm:$0xff]  ;;  %s4213_s24 = scalar_lea.vmem [#allocation14], %s2312_s21  ;;  %s4280_s4 = scalar_lea.hbm %s4343_s10, %s2363_s23 }
  0x90   : > { %2660 = vmatpush3.msra.mxu0 %v584_v0  ;;  %3043 = vmatpush3.msra.mxu1 %v584_v0  ;;  %v3880_v4 = vld [vmem:[%s3855_s9] sm:$0xff]   ;;  %v579_v7 = vld [vmem:[#allocation7 + $0x50] sm:$0xff]  ;;  %v578_v8 = vld [vmem:[#allocation7 + $0x48] sm:$0xff]  ;;  %s2138_s11 = sshll.u32 %s4213_s24, 4  ;;  %s2123_s16 = scalar_lea.sflag [#allocation4], %s3851_s0  ;;  %s4282_s11 = int_to_ptr.vmem [resolvable:$true] %s2138_s11 }
  0x91   : > { %2661 = vmatprep.subr.mxu0 %v583_v1  ;;  %3028 = vmatprep.subr.mxu1 %v583_v1  ;;  %v2366_v6 = vunpack.c.l.bf16 %v3880_v4  ;;  %v577_v9 = vld [vmem:[#allocation7 + $0x40] sm:$0xff]  ;;  %v576_v10 = vld [vmem:[#allocation7 + $0x38] sm:$0xff]  ;;  %v575_v11 = vld [vmem:[#allocation7 + $0x30] sm:$0xff]  ;;  %v2367_v20 = vunpack.c.h.bf16 %v3880_v4  ;;  %s3505_s25 = scalar_lea.vmem %s4282_s11, 4096  ;;  %s3614_s28 = smov [#allocation14]  }
  0x92   : > { %2662 = vmatpush3.msra.mxu0 %v583_v1  ;;  %3044 = vmatpush3.msra.mxu1 %v583_v1  ;;  %v574_v12 = vld [vmem:[#allocation7 + $0x28] sm:$0xff]  ;;  %v573_v13 = vld [vmem:[#allocation7 + $0x20] sm:$0xff]  ;;  %v572_v14 = vld [vmem:[#allocation7 + $0x18] sm:$0xff]  ;;  %p3506_p1 = scmp.ne.s32.totalorder %s4282_s11, %s3505_s25  ;;  %s3509_s6 = sshll.u32 %s3614_s28, 4  ;;  %s3510_s6 = int_to_ptr.vmem [resolvable:$false] %s3509_s6 }
  0x93   : > { %2663 = vmatprep.subr.mxu0 %v582_v2  ;;  %3029 = vmatprep.subr.mxu1 %v582_v2  ;;  %v571_v15 = vld [vmem:[#allocation7 + $0x10] sm:$0xff]  ;;  %v570_v16 = vld [vmem:[#allocation7 + $0x8] sm:$0xff]  ;;  %v3889_v18 = vld [vmem:[%s3855_s9 + $0x40] sm:$0xff]   ;;  %s3511_s8 = scalar_lea.vmem %s3510_s6, 8192  ;;  %p3512_p4 = scmp.lt.s32.totalorder %s4282_s11, %s3510_s6 }
  0x94   : > { %2664 = vmatpush3.msra.mxu0 %v582_v2  ;;  %3045 = vmatpush3.msra.mxu1 %v582_v2  ;;  %v3886_v17 = vld [vmem:[%s3855_s9 + $0x8] sm:$0xff]   ;;  %v2398_v23 = vunpack.c.l.bf16 %v3889_v18  ;;  %v3898_v24 = vld [vmem:[%s3855_s9 + $0x10] sm:$0xff]   ;;  %v2399_v25 = vunpack.c.h.bf16 %v3889_v18  ;;  %v864_v27 = vld [vmem:[#allocation8 + $0x78] sm:$0xff]  ;;  %p3507_p3 = pnand %p3506_p1, %p3800_p13  ;;  %p3513_p9 = scmp.lt.s32.totalorder %s3511_s8, %s3505_s25 }
  0x95   : > { %2665 = vmatprep.subr.mxu0 %v581_v3  ;;  %3030 = vmatprep.subr.mxu1 %v581_v3  ;;  %v569_v19 = vld [vmem:[#allocation7] sm:$0xff]  ;;  %v2370_v22 = vunpack.c.l.bf16 %v3886_v17  ;;  %v2371_v28 = vunpack.c.h.bf16 %v3886_v17  ;;  %v3906_v29 = vld [vmem:[%s3855_s9 + $0x50] sm:$0xff]   ;;  %v2374_v30 = vunpack.c.l.bf16 %v3898_v24  ;;  %v3914_v32 = vld [vmem:[%s3855_s9 + $0x18] sm:$0xff]   ;;  %v2375_v36 = vunpack.c.h.bf16 %v3898_v24 }
  0x96   : > { %2666 = vmatpush3.msra.mxu0 %v581_v3  ;;  %2691 = vmatprep.mubr.f32.mxu0 %v2366_v6  ;;  %v3893_v21 = vld [vmem:[%s3855_s9 + $0x48] sm:$0xff]   ;;  %v863_v31 = vld [vmem:[#allocation8 + $0x70] sm:$0xff]  ;;  %v2406_v34 = vunpack.c.l.bf16 %v3906_v29  ;;  %v2378_v38 = vunpack.c.l.bf16 %v3914_v32  ;;  %v3932_v40 = vld [vmem:[%s3855_s9 + $0x20] sm:$0xff]   ;;  %v2407_v41 = vunpack.c.h.bf16 %v3906_v29  ;;  %v2379_v44 = vunpack.c.h.bf16 %v3914_v32  ;;  %p3508_p6 = pneg %p3507_p3  ;;  %p3514_p5 = por %p3513_p9, %p3512_p4 }
  0x97   : > { %2667 = vmatprep.subr.mxu0 %v580_v5  ;;  %3046 = vmatpush3.msra.mxu1 %v581_v3  ;;  %v2402_v26 = vunpack.c.l.bf16 %v3893_v21  ;;  %v2403_v33 = vunpack.c.h.bf16 %v3893_v21  ;;  %v862_v35 = vld [vmem:[#allocation8 + $0x68] sm:$0xff]  ;;  %v3926_v37 = vld [vmem:[%s3855_s9 + $0x58] sm:$0xff]   ;;  %v861_v39 = vld [vmem:[#allocation8 + $0x60] sm:$0xff]  ;;  %v2382_v46 = vunpack.c.l.bf16 %v3932_v40  ;;  %v2383_v52 = vunpack.c.h.bf16 %v3932_v40 }
  0x98   : > { %2668 = vmatpush3.msra.mxu0 %v580_v5  ;;  %3031 = vmatprep.subr.mxu1 %v580_v5  ;;  %v4360_v42 = vunpack.c.l.bf16 %v3926_v37  ;;  %v860_v43 = vld [vmem:[#allocation8 + $0x58] sm:$0xff]  ;;  %v859_v47 = vld [vmem:[#allocation8 + $0x50] sm:$0xff]  ;;  %v3950_v48 = vld [vmem:[%s3855_s9 + $0x28] sm:$0xff]   ;;  %v4361_v49 = vunpack.c.h.bf16 %v3926_v37  ;;  %v4391_v21 = vunpack.c.l.bf16 %v3926_v37  ;;  %p3515_p8 = pnand %p3514_p5, %p3508_p6 }
  0x99   : > { %2669 = vmatprep.subr.mxu0 %v579_v7  ;;  %3047 = vmatpush3.msra.mxu1 %v580_v5  ;;  %v3944_v45 = vld [vmem:[%s3855_s9 + $0x60] sm:$0xff]   ;;  %v858_v51 = vld [vmem:[#allocation8 + $0x48] sm:$0xff]  ;;  %v2386_v54 = vunpack.c.l.bf16 %v3950_v48  ;;  %v2387_v60 = vunpack.c.h.bf16 %v3950_v48  ;;  %v855_v63 = vld [vmem:[#allocation8 + $0x30] sm:$0xff] }
  0x9a   : > { %2670 = vmatpush3.msra.mxu0 %v579_v7  ;;  %3032 = vmatprep.subr.mxu1 %v579_v7  ;;  %v4358_v50 = vunpack.c.l.bf16 %v3944_v45  ;;  %v3962_v53 = vld [vmem:[%s3855_s9 + $0x68] sm:$0xff]   ;;  %v3968_v56 = vld [vmem:[%s3855_s9 + $0x30] sm:$0xff]   ;;  %v4359_v57 = vunpack.c.h.bf16 %v3944_v45  ;;  %v856_v59 = vld [vmem:[#allocation8 + $0x38] sm:$0xff]  ;;  %v4393_v29 = vunpack.c.l.bf16 %v3944_v45 }
  0x9b   : > { %2671 = vmatprep.subr.mxu0 %v578_v8  ;;  %3048 = vmatpush3.msra.mxu1 %v579_v7  ;;  %v857_v55 = vld [vmem:[#allocation8 + $0x40] sm:$0xff]  ;;  %v4356_v58 = vunpack.c.l.bf16 %v3962_v53  ;;  %v3980_v61 = vld [vmem:[%s3855_s9 + $0x70] sm:$0xff]   ;;  %v2390_v62 = vunpack.c.l.bf16 %v3968_v56  ;;  %v3986_v0 = vld [vmem:[%s3855_s9 + $0x38] sm:$0xff]   ;;  %v4357_v1 = vunpack.c.h.bf16 %v3962_v53  ;;  %v2391_v5 = vunpack.c.h.bf16 %v3968_v56 }
  0x9c   : > { %2672 = vmatpush3.msra.mxu0 %v578_v8  ;;  %3033 = vmatprep.subr.mxu1 %v578_v8  ;;  %v4354_v2 = vunpack.c.l.bf16 %v3980_v61  ;;  %v854_v3 = vld [vmem:[#allocation8 + $0x28] sm:$0xff]  ;;  %v3998_v7 = vld [vmem:[%s3855_s9 + $0x78] sm:$0xff]  }
  0x9d   : > { %2673 = vmatprep.subr.mxu0 %v577_v9  ;;  %3049 = vmatpush3.msra.mxu1 %v578_v8  ;;  %v2394_v8 = vunpack.c.l.bf16 %v3986_v0 }
  0x9e   : > { %2674 = vmatpush3.msra.mxu0 %v577_v9  ;;  %3034 = vmatprep.subr.mxu1 %v577_v9 }
  0x9f   : > { %2675 = vmatprep.subr.mxu0 %v576_v10  ;;  %3050 = vmatpush3.msra.mxu1 %v577_v9  ;;  %v853_v9 = vld [vmem:[#allocation8 + $0x20] sm:$0xff] }
  0xa0   : > { %2676 = vmatpush3.msra.mxu0 %v576_v10  ;;  %3035 = vmatprep.subr.mxu1 %v576_v10 }
  0xa1   : > { %2677 = vmatprep.subr.mxu0 %v575_v11  ;;  %3051 = vmatpush3.msra.mxu1 %v576_v10  ;;  %v4355_v10 = vunpack.c.h.bf16 %v3980_v61 }
  0xa2   : > { %2678 = vmatpush3.msra.mxu0 %v575_v11  ;;  %3036 = vmatprep.subr.mxu1 %v575_v11 }
  0xa3   : > { %2679 = vmatprep.subr.mxu0 %v574_v12  ;;  %3052 = vmatpush3.msra.mxu1 %v575_v11  ;;  %v4352_v11 = vunpack.c.l.bf16 %v3998_v7 }
  0xa4   : > { %2680 = vmatpush3.msra.mxu0 %v574_v12  ;;  %3037 = vmatprep.subr.mxu1 %v574_v12 }
  0xa5   : > { %2681 = vmatprep.subr.mxu0 %v573_v13  ;;  %3053 = vmatpush3.msra.mxu1 %v574_v12  ;;  %v852_v12 = vld [vmem:[#allocation8 + $0x18] sm:$0xff] }
  0xa6   : > { %2682 = vmatpush3.msra.mxu0 %v573_v13  ;;  %3038 = vmatprep.subr.mxu1 %v573_v13 }
  0xa7   : > { %2683 = vmatprep.subr.mxu0 %v572_v14  ;;  %3054 = vmatpush3.msra.mxu1 %v573_v13  ;;  %v2395_v13 = vunpack.c.h.bf16 %v3986_v0 }
  0xa8   : > { %2684 = vmatpush3.msra.mxu0 %v572_v14  ;;  %3039 = vmatprep.subr.mxu1 %v572_v14 }
  0xa9   : > { %2685 = vmatprep.subr.mxu0 %v571_v15  ;;  %3055 = vmatpush3.msra.mxu1 %v572_v14  ;;  %v4353_v14 = vunpack.c.h.bf16 %v3998_v7 }
  0xaa   : > { %2686 = vmatpush3.msra.mxu0 %v571_v15  ;;  %3040 = vmatprep.subr.mxu1 %v571_v15 }
  0xab   : > { %2687 = vmatprep.subr.mxu0 %v570_v16  ;;  %3056 = vmatpush3.msra.mxu1 %v571_v15  ;;  %v851_v15 = vld [vmem:[#allocation8 + $0x10] sm:$0xff] }
  0xac   : > { %2688 = vmatpush3.msra.mxu0 %v570_v16  ;;  %3041 = vmatprep.subr.mxu1 %v570_v16 }
  0xad   : > { %2689 = vmatprep.subr.mxu0 %v569_v19  ;;  %3057 = vmatpush3.msra.mxu1 %v570_v16  ;;  %v850_v16 = vld [vmem:[#allocation8 + $0x8] sm:$0xff] }
  0xae   : > { %2690 = vmatpush3.msra.mxu0 %v569_v19  ;;  %3042 = vmatprep.subr.mxu1 %v569_v19 }
  0xaf   : > { %2692 = vmatmul.mubr.f32.vlgmr.msra.gmra.mxu0 %v2367_v20  ;;  %3058 = vmatpush3.msra.mxu1 %v569_v19  ;;  %v849_v19 = vld [vmem:[#allocation8] sm:$0xff] }
  0xb0   : > { %2694 = vmatprep.mubr.f32.mxu0 %v2370_v22  ;;  %2715 = vmatprep.mubr.f32.mxu1 %v2398_v23 }
  0xb1   : > { %2716 = vmatmul.mubr.f32.vlgmr.msra.gmra.mxu1 %v2399_v25  ;;  %2739 = vmatprep.subr.mxu1 %v864_v27 }
  0xb2   : > { %2718 = vmatprep.mubr.f32.mxu1 %v2402_v26  ;;  %2740 = vmatpush3.msra.mxu1 %v864_v27  ;;  %v1144_v27 = vld [vmem:[#allocation10 + $0x78] sm:$0xff] }
  0xb3   : > { %2695 = vmatmul.mubr.f32.gmra.mxu0 %v2371_v28  ;;  %2741 = vmatprep.subr.mxu1 %v863_v31 }
  0xb4   : > { %2697 = vmatprep.mubr.f32.mxu0 %v2374_v30  ;;  %2742 = vmatpush3.msra.mxu1 %v863_v31  ;;  %v1143_v31 = vld [vmem:[#allocation10 + $0x70] sm:$0xff] }
  0xb5   : > { %2719 = vmatmul.mubr.f32.gmra.mxu1 %v2403_v33  ;;  %2743 = vmatprep.subr.mxu1 %v862_v35 }
  0xb6   : > { %2721 = vmatprep.mubr.f32.mxu1 %v2406_v34  ;;  %2744 = vmatpush3.msra.mxu1 %v862_v35  ;;  %v1142_v35 = vld [vmem:[#allocation10 + $0x68] sm:$0xff] }
  0xb7   : > { %2698 = vmatmul.mubr.f32.gmra.mxu0 %v2375_v36  ;;  %2745 = vmatprep.subr.mxu1 %v861_v39 }
  0xb8   : > { %2700 = vmatprep.mubr.f32.mxu0 %v2378_v38  ;;  %2746 = vmatpush3.msra.mxu1 %v861_v39  ;;  %v1141_v39 = vld [vmem:[#allocation10 + $0x60] sm:$0xff] }
  0xb9   : > { %2722 = vmatmul.mubr.f32.gmra.mxu1 %v2407_v41  ;;  %2747 = vmatprep.subr.mxu1 %v860_v43 }
  0xba   : > { %2724 = vmatprep.mubr.f32.mxu1 %v4360_v42  ;;  %2748 = vmatpush3.msra.mxu1 %v860_v43  ;;  %v1140_v43 = vld [vmem:[#allocation10 + $0x58] sm:$0xff] }
  0xbb   : > { %2701 = vmatmul.mubr.f32.gmra.mxu0 %v2379_v44  ;;  %2749 = vmatprep.subr.mxu1 %v859_v47 }
  0xbc   : > { %2703 = vmatprep.mubr.f32.mxu0 %v2382_v46  ;;  %2750 = vmatpush3.msra.mxu1 %v859_v47  ;;  %v1139_v47 = vld [vmem:[#allocation10 + $0x50] sm:$0xff] }
  0xbd   : > { %2725 = vmatmul.mubr.f32.gmra.mxu1 %v4361_v49  ;;  %2751 = vmatprep.subr.mxu1 %v858_v51 }
  0xbe   : > { %2727 = vmatprep.mubr.f32.mxu1 %v4358_v50  ;;  %2752 = vmatpush3.msra.mxu1 %v858_v51  ;;  %v1138_v51 = vld [vmem:[#allocation10 + $0x48] sm:$0xff] }
  0xbf   : > { %2704 = vmatmul.mubr.f32.gmra.mxu0 %v2383_v52  ;;  %2753 = vmatprep.subr.mxu1 %v857_v55 }
  0xc0   : > { %2706 = vmatprep.mubr.f32.mxu0 %v2386_v54  ;;  %2754 = vmatpush3.msra.mxu1 %v857_v55  ;;  %v1137_v55 = vld [vmem:[#allocation10 + $0x40] sm:$0xff] }
  0xc1   : > { %2728 = vmatmul.mubr.f32.gmra.mxu1 %v4359_v57  ;;  %2755 = vmatprep.subr.mxu1 %v856_v59 }
  0xc2   : > { %2730 = vmatprep.mubr.f32.mxu1 %v4356_v58  ;;  %2756 = vmatpush3.msra.mxu1 %v856_v59  ;;  %v1136_v59 = vld [vmem:[#allocation10 + $0x38] sm:$0xff] }
  0xc3   : > { %2707 = vmatmul.mubr.f32.gmra.mxu0 %v2387_v60  ;;  %2757 = vmatprep.subr.mxu1 %v855_v63 }
  0xc4   : > { %2709 = vmatprep.mubr.f32.mxu0 %v2390_v62  ;;  %2758 = vmatpush3.msra.mxu1 %v855_v63  ;;  %v1135_v63 = vld [vmem:[#allocation10 + $0x30] sm:$0xff] }
  0xc5   : > { %2731 = vmatmul.mubr.f32.gmra.mxu1 %v4357_v1  ;;  %2759 = vmatprep.subr.mxu1 %v854_v3 }
  0xc6   : > { %2733 = vmatprep.mubr.f32.mxu1 %v4354_v2  ;;  %2760 = vmatpush3.msra.mxu1 %v854_v3  ;;  %v1134_v3 = vld [vmem:[#allocation10 + $0x28] sm:$0xff] }
  0xc7   : > { %2710 = vmatmul.mubr.f32.gmra.mxu0 %v2391_v5  ;;  %2761 = vmatprep.subr.mxu1 %v853_v9 }
  0xc8   : > { %2712 = vmatprep.mubr.f32.mxu0 %v2394_v8  ;;  %2762 = vmatpush3.msra.mxu1 %v853_v9  ;;  %v1133_v9 = vld [vmem:[#allocation10 + $0x20] sm:$0xff] }
  0xc9   : > { %2734 = vmatmul.mubr.f32.gmra.mxu1 %v4355_v10  ;;  %2763 = vmatprep.subr.mxu1 %v852_v12 }
  0xca   : > { %2736 = vmatprep.mubr.f32.mxu1 %v4352_v11  ;;  %2764 = vmatpush3.msra.mxu1 %v852_v12  ;;  %v1132_v12 = vld [vmem:[#allocation10 + $0x18] sm:$0xff] }
  0xcb   : > { %2713 = vmatmul.mubr.f32.gmra.mxu0 %v2395_v13  ;;  %2765 = vmatprep.subr.mxu1 %v851_v15 }
  0xcc   : > { %2766 = vmatpush3.msra.mxu1 %v851_v15  ;;  %2819 = vmatprep.subr.mxu0 %v1144_v27  ;;  %v4026_v15 = vld [vmem:[%s4336_s3] ss:$0 sm:$0xff] }
  0xcd   : > { %2737 = vmatmul.mubr.f32.gmra.mxu1 %v4353_v14  ;;  %2767 = vmatprep.subr.mxu1 %v850_v16 }
  0xce   : > { %2768 = vmatpush3.msra.mxu1 %v850_v16  ;;  %2820 = vmatpush3.msra.mxu0 %v1144_v27 }
  0xcf   : > { %2769 = vmatprep.subr.mxu1 %v849_v19  ;;  %2821 = vmatprep.subr.mxu0 %v1143_v31 }
  0xd0   : > { %2770 = vmatpush3.msra.mxu1 %v849_v19  ;;  %2822 = vmatpush3.msra.mxu0 %v1143_v31 }
  0xd1   : > { %2823 = vmatprep.subr.mxu0 %v1142_v35 }
  0xd2   : > { %2824 = vmatpush3.msra.mxu0 %v1142_v35 }
  0xd3   : > { %2825 = vmatprep.subr.mxu0 %v1141_v39 }
  0xd4   : > { %2826 = vmatpush3.msra.mxu0 %v1141_v39 }
  0xd5   : > { %2827 = vmatprep.subr.mxu0 %v1140_v43 }
  0xd6   : > { %2828 = vmatpush3.msra.mxu0 %v1140_v43 }
  0xd7   : > { %2829 = vmatprep.subr.mxu0 %v1139_v47 }
  0xd8   : > { %2830 = vmatpush3.msra.mxu0 %v1139_v47 }
  0xd9   : > { %2831 = vmatprep.subr.mxu0 %v1138_v51 }
  0xda   : > { %2832 = vmatpush3.msra.mxu0 %v1138_v51 }
  0xdb   : > { %2833 = vmatprep.subr.mxu0 %v1137_v55 }
  0xdc   : > { %2834 = vmatpush3.msra.mxu0 %v1137_v55 }
  0xdd   : > { %2835 = vmatprep.subr.mxu0 %v1136_v59 }
  0xde   : > { %2836 = vmatpush3.msra.mxu0 %v1136_v59 }
  0xdf   : > { %2837 = vmatprep.subr.mxu0 %v1135_v63 }
  0xe0   : > { %2838 = vmatpush3.msra.mxu0 %v1135_v63 }
  0xe1   : > { %2839 = vmatprep.subr.mxu0 %v1134_v3 }
  0xe2   : > { %2840 = vmatpush3.msra.mxu0 %v1134_v3 }
  0xe3   : > { %2841 = vmatprep.subr.mxu0 %v1133_v9 }
  0xe4   : > { %2842 = vmatpush3.msra.mxu0 %v1133_v9 }
  0xe5   : > { %2843 = vmatprep.subr.mxu0 %v1132_v12 }
  0xe6   : > { %2844 = vmatpush3.msra.mxu0 %v1132_v12 }
 0x16f   : > { %v2693_v16 = vpop.f32.mrf.mxu0 }
 0x170   : > { %v664_v19 = vadd.f32 %v2693_v16, %v4026_v15 }
 0x171   : > { %v658_v27 = vpop.f32.mrf.mxu0  ;;  %v4029_v31 = vpop.f32.mrf.mxu1 }
 0x172   : > { %v659_v35 = vadd.f32 %v4026_v15, %v658_v27  ;;  %v818_v51 = vmax.f32 %v664_v19, 0.0 }
 0x173   : > { %v2696_v39 = vpop.f32.mrf.mxu0  ;;  %v738_v43 = vpop.f32.mrf.mxu1 }
 0x174   : > { %v817_v47 = vmax.f32 %v659_v35, 0.0  ;;  %v674_v55 = vadd.f32 %v2696_v39, %v4026_v15 }
 0x175   : > { %v668_v59 = vpop.f32.mrf.mxu0  ;;  %v4033_v63 = vpop.f32.mrf.mxu1 }
 0x176   : > { %v669_v3 = vadd.f32 %v4026_v15, %v668_v59  ;;  %2771 = vmatprep.mubr.f32.mxu1 %v817_v47  ;;  %v820_v11 = vmax.f32 %v674_v55, 0.0 }
 0x177   : > { %v2699_v9 = vpop.f32.mrf.mxu0  ;;  %2772 = vmatmul.mubr.f32.vlgmr.msra.gmra.mxu1 %v818_v51  ;;  %v748_v12 = vpop.f32.mrf.mxu1 }
 0x178   : > { %v819_v16 = vmax.f32 %v669_v3, 0.0  ;;  %v684_v14 = vadd.f32 %v2699_v9, %v4026_v15 }
 0x179   : > { %v678_v27 = vpop.f32.mrf.mxu0  ;;  %v4037_v2 = vpop.f32.mrf.mxu1 }
 0x17a   : > { %v679_v19 = vadd.f32 %v4026_v15, %v678_v27  ;;  %2774 = vmatprep.mubr.f32.mxu1 %v819_v16  ;;  %v822_v10 = vmax.f32 %v684_v14, 0.0 }
 0x17b   : > { %v2702_v35 = vpop.f32.mrf.mxu0  ;;  %2775 = vmatmul.mubr.f32.gmra.mxu1 %v820_v11  ;;  %v758_v58 = vpop.f32.mrf.mxu1 }
 0x17c   : > { %v821_v39 = vmax.f32 %v679_v19, 0.0  ;;  %v694_v59 = vadd.f32 %v2702_v35, %v4026_v15 }
 0x17d   : > { %v688_v47 = vpop.f32.mrf.mxu0  ;;  %v2726_v27 = vpop.f32.mrf.mxu1 }
 0x17e   : > { %v689_v51 = vadd.f32 %v4026_v15, %v688_v47  ;;  %2777 = vmatprep.mubr.f32.mxu1 %v821_v39  ;;  %v824_v9 = vmax.f32 %v694_v59, 0.0 }
 0x17f   : > { %v2705_v55 = vpop.f32.mrf.mxu0  ;;  %2778 = vmatmul.mubr.f32.gmra.mxu1 %v822_v10  ;;  %v768_v47 = vpop.f32.mrf.mxu1 }
 0x180   : > { %v823_v3 = vmax.f32 %v689_v51, 0.0  ;;  %v704_v1 = vadd.f32 %v2705_v55, %v4026_v15 }
 0x181   : > { %v698_v50 = vpop.f32.mrf.mxu0 }
 0x182   : > { %v699_v16 = vadd.f32 %v4026_v15, %v698_v50  ;;  %2780 = vmatprep.mubr.f32.mxu1 %v823_v3  ;;  %v826_v19 = vmax.f32 %v704_v1, 0.0  ;;  %v2729_v50 = vpop.f32.mrf.mxu1 }
 0x183   : > { %v2708_v11 = vpop.f32.mrf.mxu0  ;;  %2781 = vmatmul.mubr.f32.gmra.mxu1 %v824_v9 }
 0x184   : > { %v825_v14 = vmax.f32 %v699_v16, 0.0  ;;  %v714_v35 = vadd.f32 %v2708_v11, %v4026_v15  ;;  %v739_v16 = vadd.f32 %v4026_v15, %v738_v43  ;;  %v778_v49 = vpop.f32.mrf.mxu1 }
 0x185   : > { %v708_v57 = vpop.f32.mrf.mxu0 }
 0x186   : > { %v709_v39 = vadd.f32 %v4026_v15, %v708_v57  ;;  %2783 = vmatprep.mubr.f32.mxu1 %v825_v14  ;;  %v828_v51 = vmax.f32 %v714_v35, 0.0 }
 0x187   : > { %v2711_v10 = vpop.f32.mrf.mxu0  ;;  %2784 = vmatmul.mubr.f32.gmra.mxu1 %v826_v19 }
 0x188   : > { %v827_v59 = vmax.f32 %v709_v39, 0.0  ;;  %v724_v55 = vadd.f32 %v2711_v10, %v4026_v15  ;;  %v833_v39 = vmax.f32 %v739_v16, 0.0  ;;  %v749_v10 = vadd.f32 %v4026_v15, %v748_v12 }
 0x189   : > { %v718_v42 = vpop.f32.mrf.mxu0  ;;  %v769_v12 = vadd.f32 %v4026_v15, %v768_v47 }
 0x18a   : > { %v719_v3 = vadd.f32 %v4026_v15, %v718_v42  ;;  %2786 = vmatprep.mubr.f32.mxu1 %v827_v59  ;;  %v830_v11 = vmax.f32 %v724_v55, 0.0  ;;  %v744_v59 = vadd.f32 %v4029_v31, %v4026_v15  ;;  %v835_v43 = vmax.f32 %v749_v10, 0.0 }
 0x18b   : > { %v2714_v9 = vpop.f32.mrf.mxu0  ;;  %2787 = vmatmul.mubr.f32.gmra.mxu1 %v828_v51  ;;  %v2732_v51 = vpop.f32.mrf.mxu1  ;;  %v759_v55 = vadd.f32 %v4026_v15, %v758_v58  ;;  %v764_v31 = vadd.f32 %v4037_v2, %v4026_v15  ;;  %v779_v58 = vadd.f32 %v4026_v15, %v778_v49 }
 0x18c   : > { %v829_v1 = vmax.f32 %v719_v3, 0.0  ;;  %v734_v57 = vadd.f32 %v2714_v9, %v4026_v15  ;;  %v834_v3 = vmax.f32 %v744_v59, 0.0  ;;  %v754_v9 = vadd.f32 %v4033_v63, %v4026_v15 }
 0x18d   : > { %v728_v14 = vpop.f32.mrf.mxu0  ;;  %v837_v16 = vmax.f32 %v759_v55, 0.0  ;;  %v794_v49 = vadd.f32 %v2732_v51, %v4026_v15  ;;  %v1131_v51 = vld [vmem:[#allocation10 + $0x10] sm:$0xff] }
 0x18e   : > { %v729_v19 = vadd.f32 %v4026_v15, %v728_v14  ;;  %2789 = vmatprep.mubr.f32.mxu1 %v829_v1  ;;  %v832_v42 = vmax.f32 %v734_v57, 0.0  ;;  %v788_v1 = vpop.f32.mrf.mxu1  ;;  %v839_v14 = vmax.f32 %v769_v12, 0.0  ;;  %2845 = vmatprep.subr.mxu0 %v1131_v51 }
 0x18f   : > { %2790 = vmatmul.mubr.f32.gmra.mxu1 %v830_v11  ;;  %v836_v11 = vmax.f32 %v754_v9, 0.0  ;;  %v789_v10 = vadd.f32 %v4026_v15, %v788_v1  ;;  %2846 = vmatpush3.msra.mxu0 %v1131_v51 }
 0x190   : > { %v831_v35 = vmax.f32 %v729_v19, 0.0  ;;  %v2735_v57 = vpop.f32.mrf.mxu1  ;;  %v838_v19 = vmax.f32 %v764_v31, 0.0 }
 0x191   : > { %v843_v2 = vmax.f32 %v789_v10, 0.0  ;;  %v804_v1 = vadd.f32 %v2735_v57, %v4026_v15  ;;  %v1584_v57 = vld [vmem:[#allocation11 + $0x78] sm:$0xff]  ;;  %v1578_v10 = vld [vmem:[#allocation11 + $0x48] sm:$0xff] }
 0x192   : > { %2792 = vmatprep.mubr.f32.mxu1 %v831_v35  ;;  %v774_v35 = vadd.f32 %v2726_v27, %v4026_v15  ;;  %v798_v63 = vpop.f32.mrf.mxu1  ;;  %2899 = vmatprep.subr.mxu1 %v1584_v57 }
 0x193   : > { %2793 = vmatmul.mubr.f32.gmra.mxu1 %v832_v42  ;;  %v784_v42 = vadd.f32 %v2729_v50, %v4026_v15  ;;  %v846_v12 = vmax.f32 %v804_v1, 0.0 }
 0x194   : > { %2795 = vmatprep.mubr.f32.mxu1 %v833_v39  ;;  %v841_v39 = vmax.f32 %v779_v58, 0.0  ;;  %v840_v47 = vmax.f32 %v774_v35, 0.0  ;;  %v2738_v59 = vpop.f32.mrf.mxu1  ;;  %v1129_v58 = vld [vmem:[#allocation10] sm:$0xff]  ;;  %2900 = vmatpush3.msra.mxu1 %v1584_v57  ;;  %v1582_v35 = vld [vmem:[#allocation11 + $0x68] sm:$0xff] }
 0x195   : > { %v842_v55 = vmax.f32 %v784_v42, 0.0 }
 0x197   : > { %2796 = vmatmul.mubr.f32.gmra.mxu1 %v834_v3  ;;  %v808_v3 = vpop.f32.mrf.mxu1 }
 0x198   : > { %2798 = vmatprep.mubr.f32.mxu1 %v835_v43  ;;  %v799_v43 = vadd.f32 %v4026_v15, %v798_v63  ;;  %v809_v9 = vadd.f32 %v4026_v15, %v808_v3  ;;  %v1580_v63 = vld [vmem:[#allocation11 + $0x58] sm:$0xff] }
 0x19a   : > { %v845_v27 = vmax.f32 %v799_v43, 0.0  ;;  %v847_v50 = vmax.f32 %v809_v9, 0.0 }
 0x19b   : > { %2799 = vmatmul.mubr.f32.gmra.mxu1 %v836_v11  ;;  %v814_v11 = vadd.f32 %v2738_v59, %v4026_v15  ;;  %v1581_v15 = vld [vmem:[#allocation11 + $0x60] sm:$0xff] }
 0x19c   : > { %2801 = vmatprep.mubr.f32.mxu1 %v837_v16  ;;  %v844_v16 = vmax.f32 %v794_v49, 0.0 }
 0x19d   : > { %v848_v31 = vmax.f32 %v814_v11, 0.0 }
 0x19f   : > { %2802 = vmatmul.mubr.f32.gmra.mxu1 %v838_v19  ;;  %v1583_v19 = vld [vmem:[#allocation11 + $0x70] sm:$0xff] }
 0x1a0   : > { %2804 = vmatprep.mubr.f32.mxu1 %v839_v14  ;;  %v1130_v14 = vld [vmem:[#allocation10 + $0x8] sm:$0xff]  ;;  %2901 = vmatprep.subr.mxu1 %v1583_v19 }
 0x1a1   : > { %2847 = vmatprep.subr.mxu0 %v1130_v14  ;;  %2902 = vmatpush3.msra.mxu1 %v1583_v19 }
 0x1a2   : > { %2848 = vmatpush3.msra.mxu0 %v1130_v14  ;;  %2903 = vmatprep.subr.mxu1 %v1582_v35 }
 0x1a3   : > { %2805 = vmatmul.mubr.f32.gmra.mxu1 %v840_v47  ;;  %2849 = vmatprep.subr.mxu0 %v1129_v58  ;;  %v4072_v47 = vld [vmem:[%s4338_s5] ss:$0 sm:$0xff] }
 0x1a4   : > { %2807 = vmatprep.mubr.f32.mxu1 %v841_v39  ;;  %2850 = vmatpush3.msra.mxu0 %v1129_v58  ;;  %v1579_v39 = vld [vmem:[#allocation11 + $0x50] sm:$0xff] }
 0x1a5   : > { %2904 = vmatpush3.msra.mxu1 %v1582_v35 }
 0x1a6   : > { %2905 = vmatprep.subr.mxu1 %v1581_v15 }
 0x1a7   : > { %2808 = vmatmul.mubr.f32.gmra.mxu1 %v842_v55 }
 0x1a8   : > { %2810 = vmatprep.mubr.f32.mxu1 %v843_v2  ;;  %2906 = vmatpush3.msra.mxu1 %v1581_v15 }
 0x1a9   : > { %2907 = vmatprep.subr.mxu1 %v1580_v63 }
 0x1aa   : > { %2908 = vmatpush3.msra.mxu1 %v1580_v63 }
 0x1ab   : > { %2811 = vmatmul.mubr.f32.gmra.mxu1 %v844_v16  ;;  %2909 = vmatprep.subr.mxu1 %v1579_v39 }
 0x1ac   : > { %2813 = vmatprep.mubr.f32.mxu1 %v845_v27  ;;  %2910 = vmatpush3.msra.mxu1 %v1579_v39 }
 0x1ad   : > { %2911 = vmatprep.subr.mxu1 %v1578_v10 }
 0x1ae   : > { %2912 = vmatpush3.msra.mxu1 %v1578_v10 }
 0x1af   : > { %2814 = vmatmul.mubr.f32.gmra.mxu1 %v846_v12 }
 0x1b0   : > { %2816 = vmatprep.mubr.f32.mxu1 %v847_v50 }
 0x1b3   : > { %2817 = vmatmul.mubr.f32.gmra.mxu1 %v848_v31 }
 0x237   : > { %v2773_v42 = vpop.f32.mrf.mxu1 }
 0x238   : > { %v944_v59 = vadd.f32 %v2773_v42, %v4072_v47 }
 0x239   : > { %v938_v2 = vpop.f32.mrf.mxu1 }
 0x23a   : > { %v939_v43 = vadd.f32 %v4072_v47, %v938_v2  ;;  %v1098_v3 = vmax.f32 %v944_v59, 0.0 }
 0x23b   : > { %v2776_v55 = vpop.f32.mrf.mxu1 }
 0x23c   : > { %v1097_v49 = vmax.f32 %v939_v43, 0.0  ;;  %v954_v27 = vadd.f32 %v2776_v55, %v4072_v47 }
 0x23d   : > { %v948_v9 = vpop.f32.mrf.mxu1 }
 0x23e   : > { %v949_v16 = vadd.f32 %v4072_v47, %v948_v9  ;;  %2851 = vmatprep.mubr.f32.mxu0 %v1097_v49  ;;  %v1100_v12 = vmax.f32 %v954_v27, 0.0 }
 0x23f   : > { %v2779_v1 = vpop.f32.mrf.mxu1  ;;  %2852 = vmatmul.mubr.f32.vlgmr.msra.gmra.mxu0 %v1098_v3 }
 0x240   : > { %v1099_v50 = vmax.f32 %v949_v16, 0.0  ;;  %v964_v11 = vadd.f32 %v2779_v1, %v4072_v47 }
 0x241   : > { %v958_v31 = vpop.f32.mrf.mxu1 }
 0x242   : > { %v959_v51 = vadd.f32 %v4072_v47, %v958_v31  ;;  %2854 = vmatprep.mubr.f32.mxu0 %v1099_v50  ;;  %v1102_v57 = vmax.f32 %v964_v11, 0.0 }
 0x243   : > { %v2782_v14 = vpop.f32.mrf.mxu1  ;;  %2855 = vmatmul.mubr.f32.gmra.mxu0 %v1100_v12 }
 0x244   : > { %v1101_v58 = vmax.f32 %v959_v51, 0.0  ;;  %v974_v19 = vadd.f32 %v2782_v14, %v4072_v47 }
 0x245   : > { %v968_v35 = vpop.f32.mrf.mxu1 }
 0x246   : > { %v969_v15 = vadd.f32 %v4072_v47, %v968_v35  ;;  %2857 = vmatprep.mubr.f32.mxu0 %v1101_v58  ;;  %v1104_v10 = vmax.f32 %v974_v19, 0.0 }
 0x247   : > { %v2785_v63 = vpop.f32.mrf.mxu1  ;;  %2858 = vmatmul.mubr.f32.gmra.mxu0 %v1102_v57 }
 0x248   : > { %v1103_v39 = vmax.f32 %v969_v15, 0.0  ;;  %v984_v42 = vadd.f32 %v2785_v63, %v4072_v47 }
 0x249   : > { %v978_v59 = vpop.f32.mrf.mxu1 }
 0x24a   : > { %v979_v2 = vadd.f32 %v4072_v47, %v978_v59  ;;  %2860 = vmatprep.mubr.f32.mxu0 %v1103_v39  ;;  %v1106_v49 = vmax.f32 %v984_v42, 0.0 }
 0x24b   : > { %v2788_v43 = vpop.f32.mrf.mxu1  ;;  %2861 = vmatmul.mubr.f32.gmra.mxu0 %v1104_v10 }
 0x24c   : > { %v1105_v55 = vmax.f32 %v979_v2, 0.0  ;;  %v994_v3 = vadd.f32 %v2788_v43, %v4072_v47 }
 0x24d   : > { %v988_v27 = vpop.f32.mrf.mxu1 }
 0x24e   : > { %v989_v9 = vadd.f32 %v4072_v47, %v988_v27  ;;  %2863 = vmatprep.mubr.f32.mxu0 %v1105_v55  ;;  %v1108_v50 = vmax.f32 %v994_v3, 0.0 }
 0x24f   : > { %v2791_v16 = vpop.f32.mrf.mxu1  ;;  %2864 = vmatmul.mubr.f32.gmra.mxu0 %v1106_v49 }
 0x250   : > { %v1107_v1 = vmax.f32 %v989_v9, 0.0  ;;  %v1004_v12 = vadd.f32 %v2791_v16, %v4072_v47 }
 0x251   : > { %v998_v11 = vpop.f32.mrf.mxu1 }
 0x252   : > { %v999_v31 = vadd.f32 %v4072_v47, %v998_v11  ;;  %2866 = vmatprep.mubr.f32.mxu0 %v1107_v1  ;;  %v1110_v58 = vmax.f32 %v1004_v12, 0.0 }
 0x253   : > { %v2794_v51 = vpop.f32.mrf.mxu1  ;;  %2867 = vmatmul.mubr.f32.gmra.mxu0 %v1108_v50 }
 0x254   : > { %v1109_v14 = vmax.f32 %v999_v31, 0.0  ;;  %v1014_v57 = vadd.f32 %v2794_v51, %v4072_v47 }
 0x255   : > { %v1008_v19 = vpop.f32.mrf.mxu1 }
 0x256   : > { %v1009_v35 = vadd.f32 %v4072_v47, %v1008_v19  ;;  %2869 = vmatprep.mubr.f32.mxu0 %v1109_v14  ;;  %v1112_v39 = vmax.f32 %v1014_v57, 0.0 }
 0x257   : > { %v2797_v15 = vpop.f32.mrf.mxu1  ;;  %2870 = vmatmul.mubr.f32.gmra.mxu0 %v1110_v58 }
 0x258   : > { %v1111_v63 = vmax.f32 %v1009_v35, 0.0  ;;  %v1024_v10 = vadd.f32 %v2797_v15, %v4072_v47 }
 0x259   : > { %v1018_v42 = vpop.f32.mrf.mxu1 }
 0x25a   : > { %v1019_v59 = vadd.f32 %v4072_v47, %v1018_v42  ;;  %2872 = vmatprep.mubr.f32.mxu0 %v1111_v63  ;;  %v1114_v55 = vmax.f32 %v1024_v10, 0.0 }
 0x25b   : > { %v2800_v2 = vpop.f32.mrf.mxu1  ;;  %2873 = vmatmul.mubr.f32.gmra.mxu0 %v1112_v39 }
 0x25c   : > { %v1113_v43 = vmax.f32 %v1019_v59, 0.0  ;;  %v1034_v49 = vadd.f32 %v2800_v2, %v4072_v47 }
 0x25d   : > { %v1028_v3 = vpop.f32.mrf.mxu1 }
 0x25e   : > { %v1029_v27 = vadd.f32 %v4072_v47, %v1028_v3  ;;  %2875 = vmatprep.mubr.f32.mxu0 %v1113_v43  ;;  %v1116_v1 = vmax.f32 %v1034_v49, 0.0 }
 0x25f   : > { %v2803_v9 = vpop.f32.mrf.mxu1  ;;  %2876 = vmatmul.mubr.f32.gmra.mxu0 %v1114_v55 }
 0x260   : > { %v1115_v16 = vmax.f32 %v1029_v27, 0.0  ;;  %v1044_v50 = vadd.f32 %v2803_v9, %v4072_v47 }
 0x261   : > { %v1038_v12 = vpop.f32.mrf.mxu1 }
 0x262   : > { %v1039_v11 = vadd.f32 %v4072_v47, %v1038_v12  ;;  %2878 = vmatprep.mubr.f32.mxu0 %v1115_v16  ;;  %v1118_v14 = vmax.f32 %v1044_v50, 0.0 }
 0x263   : > { %v2806_v31 = vpop.f32.mrf.mxu1  ;;  %2879 = vmatmul.mubr.f32.gmra.mxu0 %v1116_v1 }
 0x264   : > { %v1117_v51 = vmax.f32 %v1039_v11, 0.0  ;;  %v1054_v58 = vadd.f32 %v2806_v31, %v4072_v47 }
 0x265   : > { %v1048_v57 = vpop.f32.mrf.mxu1 }
 0x266   : > { %v1049_v19 = vadd.f32 %v4072_v47, %v1048_v57  ;;  %2881 = vmatprep.mubr.f32.mxu0 %v1117_v51  ;;  %v1120_v63 = vmax.f32 %v1054_v58, 0.0 }
 0x267   : > { %v2809_v35 = vpop.f32.mrf.mxu1  ;;  %2882 = vmatmul.mubr.f32.gmra.mxu0 %v1118_v14 }
 0x268   : > { %v1119_v15 = vmax.f32 %v1049_v19, 0.0  ;;  %v1064_v39 = vadd.f32 %v2809_v35, %v4072_v47 }
 0x269   : > { %v1058_v10 = vpop.f32.mrf.mxu1 }
 0x26a   : > { %v1059_v42 = vadd.f32 %v4072_v47, %v1058_v10  ;;  %2884 = vmatprep.mubr.f32.mxu0 %v1119_v15  ;;  %v1122_v43 = vmax.f32 %v1064_v39, 0.0  ;;  %v1577_v15 = vld [vmem:[#allocation11 + $0x40] sm:$0xff]  ;;  %v1575_v39 = vld [vmem:[#allocation11 + $0x30] sm:$0xff]  ;;  %v1574_v10 = vld [vmem:[#allocation11 + $0x28] sm:$0xff] }
 0x26b   : > { %v2812_v59 = vpop.f32.mrf.mxu1  ;;  %2885 = vmatmul.mubr.f32.gmra.mxu0 %v1120_v63  ;;  %2913 = vmatprep.subr.mxu1 %v1577_v15  ;;  %v1576_v63 = vld [vmem:[#allocation11 + $0x38] sm:$0xff] }
 0x26c   : > { %v1121_v2 = vmax.f32 %v1059_v42, 0.0  ;;  %v1074_v55 = vadd.f32 %v2812_v59, %v4072_v47  ;;  %2914 = vmatpush3.msra.mxu1 %v1577_v15  ;;  %v1573_v42 = vld [vmem:[#allocation11 + $0x20] sm:$0xff]  ;;  %v1571_v59 = vld [vmem:[#allocation11 + $0x10] sm:$0xff] }
 0x26d   : > { %v1068_v49 = vpop.f32.mrf.mxu1  ;;  %2915 = vmatprep.subr.mxu1 %v1576_v63 }
 0x26e   : > { %v1069_v3 = vadd.f32 %v4072_v47, %v1068_v49  ;;  %2887 = vmatprep.mubr.f32.mxu0 %v1121_v2  ;;  %v1124_v16 = vmax.f32 %v1074_v55, 0.0  ;;  %2916 = vmatpush3.msra.mxu1 %v1576_v63  ;;  %v1570_v2 = vld [vmem:[#allocation11 + $0x8] sm:$0xff]  ;;  %v3183_v55 = vld [vmem:[#allocation13 + $0x38] sm:$0xff]   ;;  %v3184_v49 = vld [vmem:[#allocation13 + $0x30] sm:$0xff]  }
 0x26f   : > { %v2815_v27 = vpop.f32.mrf.mxu1  ;;  %2888 = vmatmul.mubr.f32.gmra.mxu0 %v1122_v43  ;;  %2917 = vmatprep.subr.mxu1 %v1575_v39  ;;  %v1569_v43 = vld [vmem:[#allocation11] sm:$0xff] }
 0x270   : > { %v1123_v9 = vmax.f32 %v1069_v3, 0.0  ;;  %v1084_v1 = vadd.f32 %v2815_v27, %v4072_v47  ;;  %2918 = vmatpush3.msra.mxu1 %v1575_v39  ;;  %2979 = vmatprep.subr.bf16.mxu0 %v3183_v55  ;;  %v3185_v3 = vld [vmem:[#allocation13 + $0x28] sm:$0xff]   ;;  %v3186_v27 = vld [vmem:[#allocation13 + $0x20] sm:$0xff]  }
 0x271   : > { %v1078_v50 = vpop.f32.mrf.mxu1  ;;  %2919 = vmatprep.subr.mxu1 %v1574_v10  ;;  %2980 = vmatpush3.bf16.msra.mxu0 %v3183_v55 }
 0x272   : > { %v1079_v12 = vadd.f32 %v4072_v47, %v1078_v50  ;;  %2890 = vmatprep.mubr.f32.mxu0 %v1123_v9  ;;  %v1126_v51 = vmax.f32 %v1084_v1, 0.0  ;;  %2920 = vmatpush3.msra.mxu1 %v1574_v10  ;;  %v3187_v9 = vld [vmem:[#allocation13 + $0x18] sm:$0xff]   ;;  %v3189_v1 = vld [vmem:[#allocation13 + $0x8] sm:$0xff]  }
 0x273   : > { %v2818_v11 = vpop.f32.mrf.mxu1  ;;  %2891 = vmatmul.mubr.f32.gmra.mxu0 %v1124_v16  ;;  %2921 = vmatprep.subr.mxu1 %v1573_v42  ;;  %v3188_v16 = vld [vmem:[#allocation13 + $0x10] sm:$0xff]   ;;  %v4109_v50 = vld [vmem:[%s4340_s7] ss:$0 sm:$0xff] }
 0x274   : > { %v1125_v31 = vmax.f32 %v1079_v12, 0.0  ;;  %v1094_v14 = vadd.f32 %v2818_v11, %v4072_v47  ;;  %2922 = vmatpush3.msra.mxu1 %v1573_v42  ;;  %2981 = vmatprep.subr.bf16.mxu0 %v3184_v49 }
 0x275   : > { %v1088_v58 = vpop.f32.mrf.mxu1  ;;  %2982 = vmatpush3.bf16.msra.mxu0 %v3184_v49 }
 0x276   : > { %v1089_v57 = vadd.f32 %v4072_v47, %v1088_v58  ;;  %2893 = vmatprep.mubr.f32.mxu0 %v1125_v31  ;;  %v1128_v35 = vmax.f32 %v1094_v14, 0.0  ;;  %v1572_v47 = vld [vmem:[#allocation11 + $0x18] sm:$0xff]  ;;  %2983 = vmatprep.subr.bf16.mxu0 %v3185_v3 }
 0x277   : > { %2894 = vmatmul.mubr.f32.gmra.mxu0 %v1126_v51  ;;  %2923 = vmatprep.subr.mxu1 %v1572_v47 }
 0x278   : > { %v1127_v19 = vmax.f32 %v1089_v57, 0.0  ;;  %2924 = vmatpush3.msra.mxu1 %v1572_v47 }
 0x279   : > { %2925 = vmatprep.subr.mxu1 %v1571_v59  ;;  %2984 = vmatpush3.bf16.msra.mxu0 %v3185_v3 }
 0x27a   : > { %2896 = vmatprep.mubr.f32.mxu0 %v1127_v19  ;;  %2926 = vmatpush3.msra.mxu1 %v1571_v59 }
 0x27b   : > { %2897 = vmatmul.mubr.f32.gmra.mxu0 %v1128_v35  ;;  %2927 = vmatprep.subr.mxu1 %v1570_v2 }
 0x27c   : > { %2928 = vmatpush3.msra.mxu1 %v1570_v2  ;;  %2985 = vmatprep.subr.bf16.mxu0 %v3186_v27 }
 0x27d   : > { %2929 = vmatprep.subr.mxu1 %v1569_v43  ;;  %2986 = vmatpush3.bf16.msra.mxu0 %v3186_v27 }
 0x27e   : > { %2930 = vmatpush3.msra.mxu1 %v1569_v43  ;;  %2987 = vmatprep.subr.bf16.mxu0 %v3187_v9 }
 0x281   : > { %2988 = vmatpush3.bf16.msra.mxu0 %v3187_v9 }
 0x282   : > { %2989 = vmatprep.subr.bf16.mxu0 %v3188_v16 }
 0x285   : > { %2990 = vmatpush3.bf16.msra.mxu0 %v3188_v16 }
 0x286   : > { %2991 = vmatprep.subr.bf16.mxu0 %v3189_v1 }
 0x289   : > { %2992 = vmatpush3.bf16.msra.mxu0 %v3189_v1 }
 0x2ff   : > { %v2853_v12 = vpop.f32.mrf.mxu0 }
 0x300   : > { %v1224_v11 = vadd.f32 %v2853_v12, %v4109_v50 }
 0x301   : > { %v1218_v31 = vpop.f32.mrf.mxu0 }
 0x302   : > { %v2317_v51 = vmul.f32 -1.442695, %v1224_v11  ;;  %v1219_v14 = vadd.f32 %v4109_v50, %v1218_v31 }
 0x303   : > { %v2856_v58 = vpop.f32.mrf.mxu0 }
 0x304   : > { %3191 = vpow2.f32 %v2317_v51  ;;  %v2316_v57 = vmul.f32 -1.442695, %v1219_v14  ;;  %v1234_v19 = vadd.f32 %v2856_v58, %v4109_v50 }
 0x305   : > { %v1228_v35 = vpop.f32.mrf.mxu0 }
 0x306   : > { %3193 = vpow2.f32 %v2316_v57  ;;  %v2319_v15 = vmul.f32 -1.442695, %v1234_v19  ;;  %v1229_v63 = vadd.f32 %v4109_v50, %v1228_v35 }
 0x307   : > { %v2859_v39 = vpop.f32.mrf.mxu0 }
 0x308   : > { %3195 = vpow2.f32 %v2319_v15  ;;  %v2318_v10 = vmul.f32 -1.442695, %v1229_v63  ;;  %v1244_v42 = vadd.f32 %v2859_v39, %v4109_v50 }
 0x309   : > { %v1238_v47 = vpop.f32.mrf.mxu0 }
 0x30a   : > { %3197 = vpow2.f32 %v2318_v10  ;;  %v2321_v59 = vmul.f32 -1.442695, %v1244_v42  ;;  %v1239_v2 = vadd.f32 %v4109_v50, %v1238_v47 }
 0x30b   : > { %v2862_v43 = vpop.f32.mrf.mxu0 }
 0x30c   : > { %3199 = vpow2.f32 %v2321_v59  ;;  %v2320_v55 = vmul.f32 -1.442695, %v1239_v2  ;;  %v1254_v49 = vadd.f32 %v2862_v43, %v4109_v50 }
 0x30d   : > { %v1248_v3 = vpop.f32.mrf.mxu0 }
 0x30e   : > { %3201 = vpow2.f32 %v2320_v55  ;;  %v2323_v27 = vmul.f32 -1.442695, %v1254_v49  ;;  %v1249_v9 = vadd.f32 %v4109_v50, %v1248_v3 }
 0x30f   : > { %v2865_v16 = vpop.f32.mrf.mxu0 }
 0x310   : > { %3203 = vpow2.f32 %v2323_v27  ;;  %v2322_v1 = vmul.f32 -1.442695, %v1249_v9  ;;  %v1264_v12 = vadd.f32 %v2865_v16, %v4109_v50 }
 0x311   : > { %v3192_v11 = vpop.eup %3191  ;;  %v1258_v31 = vpop.f32.mrf.mxu0 }
 0x312   : > { %v1474_v51 = vadd.f32 1.0, %v3192_v11  ;;  %3205 = vpow2.f32 %v2322_v1  ;;  %v2325_v14 = vmul.f32 -1.442695, %v1264_v12  ;;  %v1259_v58 = vadd.f32 %v4109_v50, %v1258_v31 }
 0x313   : > { %v3194_v57 = vpop.eup %3193  ;;  %v2868_v19 = vpop.f32.mrf.mxu0 }
 0x314   : > { %3207 = vrcp.f32 %v1474_v51  ;;  %v1473_v35 = vadd.f32 1.0, %v3194_v57  ;;  %v2324_v15 = vmul.f32 -1.442695, %v1259_v58  ;;  %v1274_v63 = vadd.f32 %v2868_v19, %v4109_v50 }
 0x315   : > { %v3196_v39 = vpop.eup %3195  ;;  %3209 = vpow2.f32 %v2325_v14  ;;  %v1268_v10 = vpop.f32.mrf.mxu0 }
 0x316   : > { %3211 = vrcp.f32 %v1473_v35  ;;  %v1476_v42 = vadd.f32 1.0, %v3196_v39  ;;  %v2327_v47 = vmul.f32 -1.442695, %v1274_v63  ;;  %v1269_v59 = vadd.f32 %v4109_v50, %v1268_v10 }
 0x317   : > { %v3198_v2 = vpop.eup %3197  ;;  %3213 = vpow2.f32 %v2324_v15  ;;  %v2871_v43 = vpop.f32.mrf.mxu0 }
 0x318   : > { %3215 = vrcp.f32 %v1476_v42  ;;  %v1475_v55 = vadd.f32 1.0, %v3198_v2  ;;  %v2326_v49 = vmul.f32 -1.442695, %v1269_v59  ;;  %v1284_v3 = vadd.f32 %v2871_v43, %v4109_v50 }
 0x319   : > { %v3200_v27 = vpop.eup %3199  ;;  %3217 = vpow2.f32 %v2327_v47  ;;  %v1278_v9 = vpop.f32.mrf.mxu0 }
 0x31a   : > { %3219 = vrcp.f32 %v1475_v55  ;;  %v1478_v16 = vadd.f32 1.0, %v3200_v27  ;;  %v2329_v1 = vmul.f32 -1.442695, %v1284_v3  ;;  %v1279_v12 = vadd.f32 %v4109_v50, %v1278_v9 }
 0x31b   : > { %v3202_v11 = vpop.eup %3201  ;;  %3221 = vpow2.f32 %v2326_v49  ;;  %v2874_v31 = vpop.f32.mrf.mxu0 }
 0x31c   : > { %3223 = vrcp.f32 %v1478_v16  ;;  %v1477_v51 = vadd.f32 1.0, %v3202_v11  ;;  %v2328_v14 = vmul.f32 -1.442695, %v1279_v12  ;;  %v1294_v58 = vadd.f32 %v2874_v31, %v4109_v50 }
 0x31d   : > { %v3204_v57 = vpop.eup %3203  ;;  %3225 = vpow2.f32 %v2329_v1  ;;  %v1288_v19 = vpop.f32.mrf.mxu0 }
 0x31e   : > { %3227 = vrcp.f32 %v1477_v51  ;;  %v1480_v35 = vadd.f32 1.0, %v3204_v57  ;;  %v2331_v15 = vmul.f32 -1.442695, %v1294_v58  ;;  %v1289_v63 = vadd.f32 %v4109_v50, %v1288_v19 }
 0x31f   : > { %v3206_v39 = vpop.eup %3205  ;;  %3229 = vpow2.f32 %v2328_v14  ;;  %v2877_v10 = vpop.f32.mrf.mxu0 }
 0x320   : > { %3231 = vrcp.f32 %v1480_v35  ;;  %v1479_v42 = vadd.f32 1.0, %v3206_v39  ;;  %v2330_v47 = vmul.f32 -1.442695, %v1289_v63  ;;  %v1304_v59 = vadd.f32 %v2877_v10, %v4109_v50 }
 0x321   : > { %v3208_v2 = vpop.eup %3207  ;;  %3233 = vpow2.f32 %v2331_v15  ;;  %v1298_v43 = vpop.f32.mrf.mxu0 }
 0x322   : > { %v3210_v55 = vpop.eup %3209  ;;  %3235 = vrcp.f32 %v1479_v42  ;;  %v2333_v49 = vmul.f32 -1.442695, %v1304_v59  ;;  %v1299_v3 = vadd.f32 %v4109_v50, %v1298_v43 }
 0x323   : > { %v3212_v27 = vpop.eup %3211  ;;  %v1482_v9 = vadd.f32 1.0, %v3210_v55  ;;  %3237 = vpow2.f32 %v2330_v47  ;;  %v2880_v16 = vpop.f32.mrf.mxu0 }
 0x324   : > { %v3214_v1 = vpop.eup %3213  ;;  %3239 = vpow2.f32 %v2333_v49  ;;  %v2332_v12 = vmul.f32 -1.442695, %v1299_v3  ;;  %v1314_v11 = vadd.f32 %v2880_v16, %v4109_v50  ;;  %2931 = vmatprep.mubr.f32.mxu1 %v3212_v27 }
 0x325   : > { %v3216_v31 = vpop.eup %3215  ;;  %3241 = vrcp.f32 %v1482_v9  ;;  %v1481_v51 = vadd.f32 1.0, %v3214_v1  ;;  %v1308_v14 = vpop.f32.mrf.mxu0  ;;  %2932 = vmatmul.mubr.f32.vlgmr.msra.gmra.mxu1 %v3208_v2 }
 0x326   : > { %v3218_v58 = vpop.eup %3217  ;;  %3243 = vpow2.f32 %v2332_v12  ;;  %v2335_v57 = vmul.f32 -1.442695, %v1314_v11  ;;  %v1309_v19 = vadd.f32 %v4109_v50, %v1308_v14 }
 0x327   : > { %v3220_v35 = vpop.eup %3219  ;;  %3245 = vrcp.f32 %v1481_v51  ;;  %v1484_v15 = vadd.f32 1.0, %v3218_v58  ;;  %v2883_v63 = vpop.f32.mrf.mxu0 }
 0x328   : > { %v3222_v39 = vpop.eup %3221  ;;  %3247 = vpow2.f32 %v2335_v57  ;;  %v2334_v10 = vmul.f32 -1.442695, %v1309_v19  ;;  %v1324_v42 = vadd.f32 %v2883_v63, %v4109_v50  ;;  %2934 = vmatprep.mubr.f32.mxu1 %v3220_v35 }
 0x329   : > { %v3224_v47 = vpop.eup %3223  ;;  %3249 = vrcp.f32 %v1484_v15  ;;  %v1483_v59 = vadd.f32 1.0, %v3222_v39  ;;  %v1318_v43 = vpop.f32.mrf.mxu0  ;;  %2935 = vmatmul.mubr.f32.gmra.mxu1 %v3216_v31 }
 0x32a   : > { %v3226_v2 = vpop.eup %3225  ;;  %3251 = vpow2.f32 %v2334_v10  ;;  %v2337_v55 = vmul.f32 -1.442695, %v1324_v42  ;;  %v1319_v49 = vadd.f32 %v4109_v50, %v1318_v43 }
 0x32b   : > { %v3228_v3 = vpop.eup %3227  ;;  %3253 = vrcp.f32 %v1483_v59  ;;  %v1486_v27 = vadd.f32 1.0, %v3226_v2  ;;  %v2886_v9 = vpop.f32.mrf.mxu0 }
 0x32c   : > { %v3230_v16 = vpop.eup %3229  ;;  %3255 = vpow2.f32 %v2337_v55  ;;  %v2336_v1 = vmul.f32 -1.442695, %v1319_v49  ;;  %v1334_v12 = vadd.f32 %v2886_v9, %v4109_v50  ;;  %2937 = vmatprep.mubr.f32.mxu1 %v3228_v3 }
 0x32d   : > { %v3232_v11 = vpop.eup %3231  ;;  %3257 = vrcp.f32 %v1486_v27  ;;  %v1485_v51 = vadd.f32 1.0, %v3230_v16  ;;  %v1328_v14 = vpop.f32.mrf.mxu0  ;;  %2938 = vmatmul.mubr.f32.gmra.mxu1 %v3224_v47 }
 0x32e   : > { %v3234_v31 = vpop.eup %3233  ;;  %3259 = vpow2.f32 %v2336_v1  ;;  %v2339_v58 = vmul.f32 -1.442695, %v1334_v12  ;;  %v1329_v57 = vadd.f32 %v4109_v50, %v1328_v14 }
 0x32f   : > { %v3236_v19 = vpop.eup %3235  ;;  %3261 = vrcp.f32 %v1485_v51  ;;  %v1488_v35 = vadd.f32 1.0, %v3234_v31  ;;  %v2889_v15 = vpop.f32.mrf.mxu0 }
 0x330   : > { %v3238_v63 = vpop.eup %3237  ;;  %3263 = vpow2.f32 %v2339_v58  ;;  %v2338_v39 = vmul.f32 -1.442695, %v1329_v57  ;;  %v1344_v10 = vadd.f32 %v2889_v15, %v4109_v50  ;;  %2940 = vmatprep.mubr.f32.mxu1 %v3236_v19 }
 0x331   : > { %v3240_v42 = vpop.eup %3239  ;;  %3265 = vrcp.f32 %v1488_v35  ;;  %v1487_v59 = vadd.f32 1.0, %v3238_v63  ;;  %v1338_v43 = vpop.f32.mrf.mxu0  ;;  %2941 = vmatmul.mubr.f32.gmra.mxu1 %v3232_v11 }
 0x332   : > { %v3242_v47 = vpop.eup %3241  ;;  %v1490_v2 = vadd.f32 1.0, %v3240_v42  ;;  %3267 = vpow2.f32 %v2338_v39  ;;  %v2341_v55 = vmul.f32 -1.442695, %v1344_v10  ;;  %v1339_v49 = vadd.f32 %v4109_v50, %v1338_v43 }
 0x333   : > { %v3244_v3 = vpop.eup %3243  ;;  %3269 = vrcp.f32 %v1487_v59  ;;  %v2892_v27 = vpop.f32.mrf.mxu0 }
 0x334   : > { %v3246_v9 = vpop.eup %3245  ;;  %3271 = vrcp.f32 %v1490_v2  ;;  %v1489_v16 = vadd.f32 1.0, %v3244_v3  ;;  %v2340_v1 = vmul.f32 -1.442695, %v1339_v49  ;;  %v1354_v12 = vadd.f32 %v2892_v27, %v4109_v50 }
 0x335   : > { %v3248_v51 = vpop.eup %3247  ;;  %3273 = vpow2.f32 %v2341_v55  ;;  %2943 = vmatprep.mubr.f32.mxu1 %v3246_v9  ;;  %v1348_v14 = vpop.f32.mrf.mxu0 }
 0x336   : > { %v3250_v11 = vpop.eup %3249  ;;  %3275 = vrcp.f32 %v1489_v16  ;;  %v1492_v31 = vadd.f32 1.0, %v3248_v51  ;;  %v2343_v58 = vmul.f32 -1.442695, %v1354_v12  ;;  %v1349_v57 = vadd.f32 %v4109_v50, %v1348_v14  ;;  %2944 = vmatmul.mubr.f32.gmra.mxu1 %v3242_v47 }
 0x337   : > { %v3252_v19 = vpop.eup %3251  ;;  %3277 = vpow2.f32 %v2340_v1  ;;  %v2895_v35 = vpop.f32.mrf.mxu0 }
 0x338   : > { %v3254_v15 = vpop.eup %3253  ;;  %3279 = vrcp.f32 %v1492_v31  ;;  %v1491_v63 = vadd.f32 1.0, %v3252_v19  ;;  %v2342_v39 = vmul.f32 -1.442695, %v1349_v57  ;;  %v1364_v10 = vadd.f32 %v2895_v35, %v4109_v50 }
 0x339   : > { %v3256_v42 = vpop.eup %3255  ;;  %3281 = vpow2.f32 %v2343_v58  ;;  %2946 = vmatprep.mubr.f32.mxu1 %v3254_v15  ;;  %v1358_v59 = vpop.f32.mrf.mxu0 }
 0x33a   : > { %v3258_v43 = vpop.eup %3257  ;;  %3283 = vrcp.f32 %v1491_v63  ;;  %v2345_v2 = vmul.f32 -1.442695, %v1364_v10  ;;  %v1359_v55 = vadd.f32 %v4109_v50, %v1358_v59  ;;  %2947 = vmatmul.mubr.f32.gmra.mxu1 %v3250_v11  ;;  %v1494_v27 = vadd.f32 1.0, %v3256_v42 }
 0x33b   : > { %v3260_v47 = vpop.eup %3259  ;;  %3285 = vpow2.f32 %v2342_v39  ;;  %v2898_v49 = vpop.f32.mrf.mxu0 }
 0x33c   : > { %v3262_v3 = vpop.eup %3261  ;;  %v1493_v9 = vadd.f32 1.0, %v3260_v47  ;;  %v2344_v16 = vmul.f32 -1.442695, %v1359_v55  ;;  %v1374_v1 = vadd.f32 %v2898_v49, %v4109_v50  ;;  %3287 = vpow2.f32 %v2345_v2 }
 0x33d   : > { %v3264_v12 = vpop.eup %3263  ;;  %2949 = vmatprep.mubr.f32.mxu1 %v3262_v3  ;;  %v1368_v51 = vpop.f32.mrf.mxu0 }
 0x33e   : > { %v3266_v14 = vpop.eup %3265  ;;  %3289 = vrcp.f32 %v1493_v9  ;;  %v2347_v31 = vmul.f32 -1.442695, %v1374_v1  ;;  %v1369_v58 = vadd.f32 %v4109_v50, %v1368_v51  ;;  %2950 = vmatmul.mubr.f32.gmra.mxu1 %v3258_v43  ;;  %v1496_v19 = vadd.f32 1.0, %v3264_v12 }
 0x33f   : > { %v3268_v11 = vpop.eup %3267  ;;  %3291 = vpow2.f32 %v2344_v16 }
 0x340   : > { %v3270_v57 = vpop.eup %3269  ;;  %3293 = vrcp.f32 %v1494_v27  ;;  %v1495_v35 = vadd.f32 1.0, %v3268_v11  ;;  %v2346_v15 = vmul.f32 -1.442695, %v1369_v58 }
 0x341   : > { %v3272_v63 = vpop.eup %3271  ;;  %3295 = vpow2.f32 %v2347_v31  ;;  %2952 = vmatprep.mubr.f32.mxu1 %v3270_v57 }
 0x342   : > { %v3274_v39 = vpop.eup %3273  ;;  %3297 = vrcp.f32 %v1495_v35  ;;  %2953 = vmatmul.mubr.f32.gmra.mxu1 %v3266_v14 }
 0x343   : > { %v3276_v10 = vpop.eup %3275  ;;  %3299 = vpow2.f32 %v2346_v15  ;;  %v1498_v59 = vadd.f32 1.0, %v3274_v39 }
 0x344   : > { %v3278_v42 = vpop.eup %3277  ;;  %3301 = vrcp.f32 %v1496_v19  ;;  %2955 = vmatprep.mubr.f32.mxu1 %v3276_v10 }
 0x345   : > { %v3280_v50 = vpop.eup %3279  ;;  %v1497_v43 = vadd.f32 1.0, %v3278_v42 }
 0x346   : > { %v3282_v2 = vpop.eup %3281  ;;  %2956 = vmatmul.mubr.f32.gmra.mxu1 %v3272_v63 }
 0x347   : > { %v3284_v55 = vpop.eup %3283  ;;  %3303 = vrcp.f32 %v1497_v43  ;;  %v1500_v49 = vadd.f32 1.0, %v3282_v2  ;;  %v3190_v43 = vld [vmem:[#allocation13] sm:$0xff]  }
 0x348   : > { %v3286_v47 = vpop.eup %3285  ;;  %3305 = vrcp.f32 %v1498_v59  ;;  %2958 = vmatprep.mubr.f32.mxu1 %v3284_v55  ;;  %2993 = vmatprep.subr.bf16.mxu0 %v3190_v43 }
 0x349   : > { %v1499_v3 = vadd.f32 1.0, %v3286_v47  ;;  %v3288_v27 = vpop.eup %3287  ;;  %2994 = vmatpush3.bf16.msra.mxu0 %v3190_v43 }
 0x34a   : > { %2959 = vmatmul.mubr.f32.gmra.mxu1 %v3280_v50  ;;  %v1502_v1 = vadd.f32 1.0, %v3288_v27 }
 0x34b   : > { %v3290_v9 = vpop.eup %3289  ;;  %3307 = vrcp.f32 %v1499_v3 }
 0x34c   : > { %v3292_v16 = vpop.eup %3291  ;;  %3309 = vrcp.f32 %v1500_v49  ;;  %2961 = vmatprep.mubr.f32.mxu1 %v3290_v9 }
 0x34d   : > { %v3294_v12 = vpop.eup %3293  ;;  %v1501_v51 = vadd.f32 1.0, %v3292_v16 }
 0x34e   : > { %v3296_v14 = vpop.eup %3295  ;;  %2962 = vmatmul.mubr.f32.gmra.mxu1 %v3294_v12 }
 0x34f   : > { %v3298_v31 = vpop.eup %3297  ;;  %3311 = vrcp.f32 %v1501_v51  ;;  %v1504_v11 = vadd.f32 1.0, %v3296_v14 }
 0x350   : > { %v3300_v58 = vpop.eup %3299  ;;  %3313 = vrcp.f32 %v1502_v1  ;;  %2964 = vmatprep.mubr.f32.mxu1 %v3298_v31 }
 0x351   : > { %v3302_v57 = vpop.eup %3301  ;;  %v1503_v19 = vadd.f32 1.0, %v3300_v58 }
 0x352   : > { %2965 = vmatmul.mubr.f32.gmra.mxu1 %v3302_v57 }
 0x353   : > { %3315 = vrcp.f32 %v1503_v19 }
 0x354   : > { %v3304_v35 = vpop.eup %3303  ;;  %3317 = vrcp.f32 %v1504_v11 }
 0x355   : > { %v3306_v15 = vpop.eup %3305  ;;  %2967 = vmatprep.mubr.f32.mxu1 %v3304_v35 }
 0x356   : > { %2968 = vmatmul.mubr.f32.gmra.mxu1 %v3306_v15 }
 0x358   : > { %v3308_v63 = vpop.eup %3307 }
 0x359   : > { %v3310_v39 = vpop.eup %3309  ;;  %2970 = vmatprep.mubr.f32.mxu1 %v3308_v63 }
 0x35a   : > { %2971 = vmatmul.mubr.f32.gmra.mxu1 %v3310_v39 }
 0x35c   : > { %v3312_v10 = vpop.eup %3311 }
 0x35d   : > { %v3314_v42 = vpop.eup %3313  ;;  %2973 = vmatprep.mubr.f32.mxu1 %v3312_v10 }
 0x35e   : > { %2974 = vmatmul.mubr.f32.gmra.mxu1 %v3314_v42 }
 0x360   : > { %v3316_v59 = vpop.eup %3315 }
 0x361   : > { %v3318_v50 = vpop.eup %3317  ;;  %2976 = vmatprep.mubr.f32.mxu1 %v3316_v59 }
 0x362   : > { %2977 = vmatmul.mubr.f32.gmra.mxu1 %v3318_v50 }
 0x3e5   : > { %v2933_v2 = vpop.f32.mrf.mxu1 }
 0x3e6   : > { %v1811_v47 = vmul.f32 %v2933_v2, %v2367_v20 }
 0x3e7   : > { %v1651_v55 = vpop.f32.mrf.mxu1 }
 0x3e8   : > { %v1810_v49 = vmul.f32 %v2366_v6, %v1651_v55 }
 0x3e9   : > { %v2936_v3 = vpop.f32.mrf.mxu1 }
 0x3ea   : > { %v1842_v27 = vpack.c.bf16 %v1811_v47, %v1810_v49  ;;  %v1813_v16 = vmul.f32 %v2936_v3, %v2371_v28  ;;  %v4390_v3 = vunpack.c.h.bf16 %v3926_v37  ;;  %v4395_v37 = vunpack.c.l.bf16 %v3962_v53 }
 0x3eb   : > { %v1661_v9 = vpop.f32.mrf.mxu1 }
 0x3ec   : > { %v1812_v1 = vmul.f32 %v2370_v22, %v1661_v9  ;;  %2995 = vmatprep.mubr.bf16.mxu0 %v1842_v27 }
 0x3ed   : > { %v2939_v12 = vpop.f32.mrf.mxu1 }
 0x3ee   : > { %v1843_v51 = vpack.c.bf16 %v1813_v16, %v1812_v1  ;;  %v1815_v31 = vmul.f32 %v2939_v12, %v2375_v36  ;;  %v4392_v1 = vunpack.c.h.bf16 %v3944_v45 }
 0x3ef   : > { %v1671_v14 = vpop.f32.mrf.mxu1 }
 0x3f0   : > { %v1814_v4 = vmul.f32 %v2374_v30, %v1671_v14  ;;  %2996 = vmatmul.mubr.bf16.vlgmr.msra.gmra.mxu0 %v1843_v51 }
 0x3f1   : > { %v2942_v6 = vpop.f32.mrf.mxu1 }
 0x3f2   : > { %v1844_v20 = vpack.c.bf16 %v1815_v31, %v1814_v4  ;;  %v1817_v28 = vmul.f32 %v2942_v6, %v2379_v44  ;;  %v4394_v31 = vunpack.c.h.bf16 %v3962_v53 }
 0x3f3   : > { %v1681_v58 = vpop.f32.mrf.mxu1 }
 0x3f4   : > { %v1816_v17 = vmul.f32 %v2378_v38, %v1681_v58  ;;  %2999 = vmatprep.mubr.bf16.mxu0 %v1844_v20 }
 0x3f6   : > { %v1845_v22 = vpack.c.bf16 %v1817_v28, %v1816_v17  ;;  %v2945_v11 = vpop.f32.mrf.mxu1  ;;  %v4396_v17 = vunpack.c.h.bf16 %v3980_v61 }
 0x3f7   : > { %v1819_v36 = vmul.f32 %v2945_v11, %v2383_v52 }
 0x3f8   : > { %v1691_v57 = vpop.f32.mrf.mxu1  ;;  %3000 = vmatmul.mubr.bf16.gmra.mxu0 %v1845_v22  ;;  %v4397_v22 = vunpack.c.l.bf16 %v3980_v61 }
 0x3f9   : > { %v1818_v24 = vmul.f32 %v2382_v46, %v1691_v57 }
 0x3fa   : > { %v2948_v30 = vpop.f32.mrf.mxu1 }
 0x3fb   : > { %v1846_v19 = vpack.c.bf16 %v1819_v36, %v1818_v24  ;;  %v1821_v44 = vmul.f32 %v2948_v30, %v2387_v60  ;;  %v4398_v30 = vunpack.c.h.bf16 %v3998_v7 }
 0x3fc   : > { %v1701_v35 = vpop.f32.mrf.mxu1 }
 0x3fd   : > { %v1820_v32 = vmul.f32 %v2386_v54, %v1701_v35  ;;  %3003 = vmatprep.mubr.bf16.mxu0 %v1846_v19  ;;  %v4399_v19 = vunpack.c.l.bf16 %v3998_v7 }
 0x3fe   : > { %v2951_v38 = vpop.f32.mrf.mxu1 }
 0x3ff   : > { %v1847_v15 = vpack.c.bf16 %v1821_v44, %v1820_v32  ;;  %v1823_v39 = vmul.f32 %v2951_v38, %v2391_v5  ;;  %v4210_v32 = vld [vmem:[%s441_s18] ss:$0 sm:$0xff] }
 0x400   : > { %v1711_v63 = vpop.f32.mrf.mxu1 }
 0x401   : > { %v1822_v40 = vmul.f32 %v2390_v62, %v1711_v63  ;;  %3004 = vmatmul.mubr.bf16.gmra.mxu0 %v1847_v15 }
 0x402   : > { %v2954_v46 = vpop.f32.mrf.mxu1 }
 0x403   : > { %v1848_v52 = vpack.c.bf16 %v1823_v39, %v1822_v40  ;;  %v1825_v60 = vmul.f32 %v2954_v46, %v2395_v13 }
 0x404   : > { %v1721_v10 = vpop.f32.mrf.mxu1 }
 0x405   : > { %v1824_v48 = vmul.f32 %v2394_v8, %v1721_v10  ;;  %3007 = vmatprep.mubr.bf16.mxu0 %v1848_v52 }
 0x406   : > { %v2957_v54 = vpop.f32.mrf.mxu1 }
 0x407   : > { %v1849_v42 = vpack.c.bf16 %v1825_v60, %v1824_v48  ;;  %v1827_v5 = vmul.f32 %v2957_v54, %v2399_v25 }
 0x408   : > { %v1731_v59 = vpop.f32.mrf.mxu1 }
 0x409   : > { %v1826_v56 = vmul.f32 %v2398_v23, %v1731_v59  ;;  %3008 = vmatmul.mubr.bf16.gmra.mxu0 %v1849_v42 }
 0x40a   : > { %v2960_v62 = vpop.f32.mrf.mxu1 }
 0x40b   : > { %v1850_v50 = vpack.c.bf16 %v1827_v5, %v1826_v56  ;;  %v1829_v13 = vmul.f32 %v2960_v62, %v2403_v33 }
 0x40c   : > { %v1741_v43 = vpop.f32.mrf.mxu1 }
 0x40d   : > { %v1828_v0 = vmul.f32 %v2402_v26, %v1741_v43  ;;  %3011 = vmatprep.mubr.bf16.mxu0 %v1850_v50 }
 0x40e   : > { %v2963_v8 = vpop.f32.mrf.mxu1 }
 0x40f   : > { %v1851_v2 = vpack.c.bf16 %v1829_v13, %v1828_v0  ;;  %v1831_v25 = vmul.f32 %v2963_v8, %v2407_v41 }
 0x410   : > { %v1751_v55 = vpop.f32.mrf.mxu1 }
 0x411   : > { %v1830_v18 = vmul.f32 %v2406_v34, %v1751_v55  ;;  %3012 = vmatmul.mubr.bf16.gmra.mxu0 %v1851_v2 }
 0x412   : > { %v2966_v23 = vpop.f32.mrf.mxu1 }
 0x413   : > { %v1852_v47 = vpack.c.bf16 %v1831_v25, %v1830_v18  ;;  %v1833_v33 = vmul.f32 %v2966_v23, %v4390_v3 }
 0x414   : > { %v1761_v49 = vpop.f32.mrf.mxu1 }
 0x415   : > { %v1832_v26 = vmul.f32 %v4391_v21, %v1761_v49  ;;  %3015 = vmatprep.mubr.bf16.mxu0 %v1852_v47 }
 0x416   : > { %v2969_v27 = vpop.f32.mrf.mxu1 }
 0x417   : > { %v1853_v9 = vpack.c.bf16 %v1833_v33, %v1832_v26  ;;  %v1835_v41 = vmul.f32 %v2969_v27, %v4392_v1 }
 0x418   : > { %v1771_v16 = vpop.f32.mrf.mxu1 }
 0x419   : > { %v1834_v34 = vmul.f32 %v4393_v29, %v1771_v16  ;;  %3016 = vmatmul.mubr.bf16.gmra.mxu0 %v1853_v9 }
 0x41a   : > { %v2972_v12 = vpop.f32.mrf.mxu1 }
 0x41b   : > { %v1854_v51 = vpack.c.bf16 %v1835_v41, %v1834_v34  ;;  %v1837_v4 = vmul.f32 %v2972_v12, %v4394_v31 }
 0x41c   : > { %v1781_v14 = vpop.f32.mrf.mxu1 }
 0x41d   : > { %v1836_v6 = vmul.f32 %v4395_v37, %v1781_v14  ;;  %3019 = vmatprep.mubr.bf16.mxu0 %v1854_v51 }
 0x41e   : > { %v2975_v20 = vpop.f32.mrf.mxu1 }
 0x41f   : > { %v1855_v58 = vpack.c.bf16 %v1837_v4, %v1836_v6  ;;  %v1839_v45 = vmul.f32 %v2975_v20, %v4396_v17 }
 0x420   : > { %v1791_v28 = vpop.f32.mrf.mxu1 }
 0x421   : > { %v1838_v11 = vmul.f32 %v4397_v22, %v1791_v28  ;;  %3020 = vmatmul.mubr.bf16.gmra.mxu0 %v1855_v58 }
 0x422   : > { %v2978_v57 = vpop.f32.mrf.mxu1 }
 0x423   : > { %v1856_v36 = vpack.c.bf16 %v1839_v45, %v1838_v11  ;;  %v1841_v53 = vmul.f32 %v2978_v57, %v4398_v30 }
 0x424   : > { %v1801_v24 = vpop.f32.mrf.mxu1 }
 0x425   : > { %v1840_v35 = vmul.f32 %v4399_v19, %v1801_v24  ;;  %3023 = vmatprep.mubr.bf16.mxu0 %v1856_v36 }
 0x427   : > { %v1857_v44 = vpack.c.bf16 %v1841_v53, %v1840_v35 }
 0x429   : > { %3024 = vmatmul.mubr.bf16.gmra.mxu0 %v1857_v44 }
 0x4b0   : > { %v2997_v38 = vpop.f32.mrf.mxu0 }
 0x4b1   : > { %v1972_v61 = vadd.f32 %v2997_v38, %v4210_v32 }
 0x4b2   : > { %v1963_v15 = vpop.f32.mrf.mxu0 }
 0x4b3   : > { %2092 = vst [vmem:[%s4213_s24 + $0x10] sm:$0xff] %v1972_v61  ;;  %v1964_v7 = vadd.f32 %v4210_v32, %v1963_v15 }
 0x4b4   : > { %v2998_v63 = vpop.f32.mrf.mxu0 }
 0x4b5   : > { %2090 = vst [vmem:[%s4213_s24] sm:$0xff] %v1964_v7  ;;  %v1975_v39 = vadd.f32 %v2998_v63, %v4210_v32 }
 0x4b6   : > { %v1966_v40 = vpop.f32.mrf.mxu0 }
 0x4b7   : > { %2093 = vst [vmem:[%s4213_s24 + $0x18] sm:$0xff] %v1975_v39  ;;  %v1967_v46 = vadd.f32 %v4210_v32, %v1966_v40 }
 0x4b8   : > { %v3001_v52 = vpop.f32.mrf.mxu0 }
 0x4b9   : > { %2091 = vst [vmem:[%s4213_s24 + $0x8] sm:$0xff] %v1967_v46  ;;  %v1988_v10 = vadd.f32 %v3001_v52, %v4210_v32 }
 0x4ba   : > { %v1979_v60 = vpop.f32.mrf.mxu0 }
 0x4bb   : > { %2096 = vst [vmem:[%s4213_s24 + $0x30] sm:$0xff] %v1988_v10  ;;  %v1980_v48 = vadd.f32 %v4210_v32, %v1979_v60 }
 0x4bc   : > { %v3002_v54 = vpop.f32.mrf.mxu0 }
 0x4bd   : > { %2094 = vst [vmem:[%s4213_s24 + $0x20] sm:$0xff] %v1980_v48  ;;  %v1991_v42 = vadd.f32 %v3002_v54, %v4210_v32 }
 0x4be   : > { %v1982_v59 = vpop.f32.mrf.mxu0 }
 0x4bf   : > { %2097 = vst [vmem:[%s4213_s24 + $0x38] sm:$0xff] %v1991_v42  ;;  %v1983_v5 = vadd.f32 %v4210_v32, %v1982_v59 }
 0x4c1   : > { %2095 = vst [vmem:[%s4213_s24 + $0x28] sm:$0xff] %v1983_v5  ;;  %v3005_v56 = vpop.f32.mrf.mxu0 }
 0x4c2   : > { %v2004_v62 = vadd.f32 %v3005_v56, %v4210_v32 }
 0x4c3   : > { %v1995_v50 = vpop.f32.mrf.mxu0 }
 0x4c4   : > { %2100 = vst [vmem:[%s4213_s24 + $0x50] sm:$0xff] %v2004_v62  ;;  %v1996_v43 = vadd.f32 %v4210_v32, %v1995_v50 }
 0x4c5   : > { %v3006_v13 = vpop.f32.mrf.mxu0 }
 0x4c6   : > { %2098 = vst [vmem:[%s4213_s24 + $0x40] sm:$0xff] %v1996_v43  ;;  %v2007_v0 = vadd.f32 %v3006_v13, %v4210_v32 }
 0x4c7   : > { %v1998_v8 = vpop.f32.mrf.mxu0 }
 0x4c8   : > { %2101 = vst [vmem:[%s4213_s24 + $0x58] sm:$0xff] %v2007_v0  ;;  %v1999_v2 = vadd.f32 %v4210_v32, %v1998_v8 }
 0x4c9   : > { %v3009_v55 = vpop.f32.mrf.mxu0 }
 0x4ca   : > { %2099 = vst [vmem:[%s4213_s24 + $0x48] sm:$0xff] %v1999_v2  ;;  %v2020_v25 = vadd.f32 %v3009_v55, %v4210_v32 }
 0x4cb   : > { %v2011_v18 = vpop.f32.mrf.mxu0 }
 0x4cc   : > { %2104 = vst [vmem:[%s4213_s24 + $0x70] sm:$0xff] %v2020_v25  ;;  %v2012_v23 = vadd.f32 %v4210_v32, %v2011_v18 }
 0x4cd   : > { %v3010_v47 = vpop.f32.mrf.mxu0 }
 0x4ce   : > { %2102 = vst [vmem:[%s4213_s24 + $0x60] sm:$0xff] %v2012_v23  ;;  %v2023_v49 = vadd.f32 %v3010_v47, %v4210_v32 }
 0x4cf   : > { %v2014_v3 = vpop.f32.mrf.mxu0 }
 0x4d0   : > { %2105 = vst [vmem:[%s4213_s24 + $0x78] sm:$0xff] %v2023_v49  ;;  %v2015_v33 = vadd.f32 %v4210_v32, %v2014_v3 }
 0x4d1   : > { %v3013_v21 = vpop.f32.mrf.mxu0 }
 0x4d2   : > { %2103 = vst [vmem:[%s4213_s24 + $0x68] sm:$0xff] %v2015_v33  ;;  %v2036_v26 = vadd.f32 %v3013_v21, %v4210_v32 }
 0x4d3   : > { %v2027_v27 = vpop.f32.mrf.mxu0 }
 0x4d4   : > { %2108 = vst [vmem:[%s4213_s24 + $0x90] sm:$0xff] %v2036_v26  ;;  %v2028_v9 = vadd.f32 %v4210_v32, %v2027_v27 }
 0x4d5   : > { %v3014_v16 = vpop.f32.mrf.mxu0 }
 0x4d6   : > { %2106 = vst [vmem:[%s4213_s24 + $0x80] sm:$0xff] %v2028_v9  ;;  %v2039_v1 = vadd.f32 %v3014_v16, %v4210_v32 }
 0x4d7   : > { %v2030_v41 = vpop.f32.mrf.mxu0 }
 0x4d8   : > { %2109 = vst [vmem:[%s4213_s24 + $0x98] sm:$0xff] %v2039_v1  ;;  %v2031_v29 = vadd.f32 %v4210_v32, %v2030_v41 }
 0x4d9   : > { %v3017_v34 = vpop.f32.mrf.mxu0 }
 0x4da   : > { %2107 = vst [vmem:[%s4213_s24 + $0x88] sm:$0xff] %v2031_v29  ;;  %v2052_v12 = vadd.f32 %v3017_v34, %v4210_v32 }
 0x4db   : > { %v2043_v51 = vpop.f32.mrf.mxu0 }
 0x4dc   : > { %2112 = vst [vmem:[%s4213_s24 + $0xb0] sm:$0xff] %v2052_v12  ;;  %v2044_v14 = vadd.f32 %v4210_v32, %v2043_v51 }
 0x4dd   : > { %v3018_v31 = vpop.f32.mrf.mxu0 }
 0x4de   : > { %2110 = vst [vmem:[%s4213_s24 + $0xa0] sm:$0xff] %v2044_v14  ;;  %v2055_v4 = vadd.f32 %v3018_v31, %v4210_v32 }
 0x4df   : > { %v2046_v37 = vpop.f32.mrf.mxu0 }
 0x4e0   : > { %2113 = vst [vmem:[%s4213_s24 + $0xb8] sm:$0xff] %v2055_v4  ;;  %v2047_v6 = vadd.f32 %v4210_v32, %v2046_v37 }
 0x4e1   : > { %v3021_v20 = vpop.f32.mrf.mxu0 }
 0x4e2   : > { %2111 = vst [vmem:[%s4213_s24 + $0xa8] sm:$0xff] %v2047_v6  ;;  %v2068_v58 = vadd.f32 %v3021_v20, %v4210_v32 }
 0x4e3   : > { %v2059_v28 = vpop.f32.mrf.mxu0 }
 0x4e4   : > { %2116 = vst [vmem:[%s4213_s24 + $0xd0] sm:$0xff] %v2068_v58  ;;  %v2060_v17 = vadd.f32 %v4210_v32, %v2059_v28 }
 0x4e5   : > { %v3022_v45 = vpop.f32.mrf.mxu0 }
 0x4e6   : > { %2114 = vst [vmem:[%s4213_s24 + $0xc0] sm:$0xff] %v2060_v17  ;;  %v2071_v22 = vadd.f32 %v3022_v45, %v4210_v32 }
 0x4e7   : > { %v2062_v11 = vpop.f32.mrf.mxu0 }
 0x4e8   : > { %2117 = vst [vmem:[%s4213_s24 + $0xd8] sm:$0xff] %v2071_v22  ;;  %v2063_v57 = vadd.f32 %v4210_v32, %v2062_v11 }
 0x4e9   : > { %v3025_v36 = vpop.f32.mrf.mxu0 }
 0x4ea   : > { %2115 = vst [vmem:[%s4213_s24 + $0xc8] sm:$0xff] %v2063_v57  ;;  %v2084_v24 = vadd.f32 %v3025_v36, %v4210_v32 }
 0x4eb   : > { %v2075_v30 = vpop.f32.mrf.mxu0 }
 0x4ec   : > { %2120 = vst [vmem:[%s4213_s24 + $0xf0] sm:$0xff] %v2084_v24  ;;  %v2076_v53 = vadd.f32 %v4210_v32, %v2075_v30 }
 0x4ed   : > { %v3026_v19 = vpop.f32.mrf.mxu0 }
 0x4ee   : > { %2118 = vst [vmem:[%s4213_s24 + $0xe0] sm:$0xff] %v2076_v53  ;;  %v2087_v35 = vadd.f32 %v3026_v19, %v4210_v32 }
 0x4ef   : > { %v2078_v44 = vpop.f32.mrf.mxu0 }
 0x4f0   : > { %2121 = vst [vmem:[%s4213_s24 + $0xf8] sm:$0xff] %v2087_v35  ;;  %v2079_v38 = vadd.f32 %v4210_v32, %v2078_v44 }
 0x4f2   : > { %2119 = vst [vmem:[%s4213_s24 + $0xe8] sm:$0xff] %v2079_v38 }
 0x4f3   : > { %3518 = shalt.err (!%p3515_p8)
}
 0x4f4   : > { %s3519_s9 = scalar_lea.hbm %s4280_s4, 4096  ;;  %s3523_s18 = scalar_lea.hbm %s4343_s10, 8192 }
 0x4f5   : > { %p3520_p11 = scmp.ne.s32.totalorder %s4280_s4, %s3519_s9  ;;  %p3524_p0 = scmp.lt.s32.totalorder %s4280_s4, %s4343_s10 }
 0x4f6   : > { %p3525_p2 = scmp.lt.s32.totalorder %s3523_s18, %s3519_s9 }
 0x4f7   : > { %p3521_p12 = pnand %p3520_p11, %p3800_p13 }
 0x4f8   : > { %p3526_p1 = por %p3525_p2, %p3524_p0 }
 0x4f9   : > { %p3522_p10 = pneg %p3521_p12 }
 0x4fb   : > { %p3527_p3 = pnand %p3526_p1, %p3522_p10 }
 0x4fd   : > { %3530 = shalt.err (!%p3527_p3)
}
 0x4fe   : > { %s3615_s26 = smov 128   ;;  %s3616_s22 = smov 8  }
 0x4ff   : > { %3083 = dma.vmem_to_hbm [thread:$0]  (%p3800_p13), %s4282_s11, 4096, %s4280_s4, %s2123_s16, %s3615_s26, %s3615_s26, %s3616_s22  }
 0x500 PF: > { %s4400_s12 = sld [smem:[#allocation21_spill]] }
 0x501   : > { %s4402_s21 = sld [smem:[#allocation23_spill]] }
 0x506   : > { %s2153_s24 = sand.u32 1, %s4400_s12  }
 0x507   : > { %p4403_p6 = scmp.ge.s32.totalorder %s4402_s21, 2  ;;  %s2154_s23 = scalar_lea.sflag [#allocation4], %s2153_s24 }
 0x509   : > { %p3109_p4 = pnand %p4403_p6, %p3808_p7 }
 0x50b   : > { %p3110_p9 = pneg %p3109_p4 }
 0x50d   : > { %3576 = dma.done.wait (%p3110_p9), %s2154_s23, 4096  }
 0x50e   : > { %3578 = vsyncadd (%p3110_p9), %s2154_s23, 4294963200  ;;  %s31_s18 = sadd.s32 1, %s4402_s21   ;;  %s4404_s29 = sld [smem:[#allocation22_spill]] }
 0x50f   : > { %p28_p5 = scmp.ge.s32.totalorder %s31_s18, 4   ;;  %s4405_s15 = sld [smem:[#allocation25_spill]] }
 0x510   : > { %s4406_s27 = sld [smem:[#allocation24_spill]]  ;;  %s4407_s13 = smov %s3585_s14 }
 0x511   : > { %s4409_s16 = smov %s3597_s17 }
 0x512   :  { %30 = sbr.rel (!%p28_p5) target bundleno = 17 (0x11), region = 138 }
 0x514   : > { %s4408_s14 = smov %s4404_s29 }
 0x516   : > { %s4410_s17 = smov %s4406_s27 }
 0x517   :  { %2159 = vsyncpa [#allocation3], 1 }
 0x518   :  { %2161 = vsyncpa [#allocation3 + $0x1], 1 }
 0x519   :  { %2162 = vsyncpa [#allocation6], 1 }
 0x51a   :  { %2164 = vsyncpa [#allocation6 + $0x1], 1 }
 0x51b   :  { %2165 = vsyncpa [#allocation9], 1 }
 0x51c   :  { %2166 = vsyncpa [#allocation12], 1 }
 0x51d   :  { %2167 = vsyncpa [#allocation4], 1 }
 0x51e   :  { %2169 = vsyncpa [#allocation4 + $0x1], 1 }

</bundles_post_ra>
